<compile_context>
chip_gen: v7x
topology: tpu7x:2x2x1
jax: 0.10.0
libtpu: 0.0.40
codegen_flags: <defaults>
</compile_context>

<pallas_src>
import functools

import jax
import jax.numpy as jnp
from jax.experimental import pallas as pl
from jax.experimental.pallas import tpu as pltpu

H = 10  # hidden width of the MLP

# Packed parameter layout (flat f32 vector living in SMEM).
_W1_OFF = 0                  # fc1.weight[j, 0]           -> 10 scalars
_B1_OFF = _W1_OFF + H        # fc1.bias[j]                -> 10
_W2_OFF = _B1_OFF + H        # fc2.weight[k, j] row-major -> 100
_B2_OFF = _W2_OFF + H * H    # fc2.bias[k]                -> 10
_W3_OFF = _B2_OFF + H        # fc3.weight[0, k]           -> 10
_B3_OFF = _W3_OFF + H        # fc3.bias[0]                -> 1
_N_PARAMS = _B3_OFF + 1      # 141


def _round_up(a, m):
    return (a + m - 1) // m * m


def _mlp_kernel(p_ref, x_ref, o_ref):
    """One batch tile: x_ref (TILE_S, 128) -> o_ref (TILE_S, 128).

    Batch elements occupy lanes + sublanes (fully dense I/O); the 10-wide hidden
    dimension is unrolled as scalar-broadcast VPU ops (the MXU would be idle at
    K=1 / N=1 / 10x10).
    """
    x = x_ref[...]  # (TILE_S, 128) f32, TILE_S*128 independent batch elements

    # fc1 + ReLU: h1[j] = relu(x * W1[j] + b1[j])   (pure VPU broadcast)
    h1 = [
        jnp.maximum(x * p_ref[_W1_OFF + j] + p_ref[_B1_OFF + j], 0.0)
        for j in range(H)
    ]

    # fc2 + ReLU: h2[k] = relu(sum_j W2[k, j] * h1[j] + b2[k])
    h2 = []
    for k in range(H):
        acc = h1[0] * p_ref[_W2_OFF + k * H]
        for j in range(1, H):
            acc = acc + h1[j] * p_ref[_W2_OFF + k * H + j]
        h2.append(jnp.maximum(acc + p_ref[_B2_OFF + k], 0.0))

    # fc3: out = sum_k W3[k] * h2[k] + b3
    out = h2[0] * p_ref[_W3_OFF]
    for k in range(1, H):
        out = out + h2[k] * p_ref[_W3_OFF + k]
    o_ref[...] = out + p_ref[_B3_OFF]


def pack_params(params):
    """Flatten PyTorch-layout (out_features, in_features) weights into the SMEM vector."""
    return jnp.concatenate([
        params["fc1_w"].reshape(H),       # (10, 1)
        params["fc1_b"].reshape(H),
        params["fc2_w"].reshape(H * H),   # (10, 10) row-major => W2[k, j]
        params["fc2_b"].reshape(H),
        params["fc3_w"].reshape(H),       # (1, 10)
        params["fc3_b"].reshape(1),
    ]).astype(jnp.float32)


@functools.partial(jax.jit, static_argnames=("max_tile_rows",))
def intelligence_net_forward(x, packed_params, *, max_tile_rows=512):
    """x: (B, 1) float32. packed_params: (141,) float32 from pack_params()."""
    B = x.shape[0]

    rows = _round_up(max(B, 1), 128) // 128          # 128-wide lane groups needed
    tile_s = min(max_tile_rows, _round_up(rows, 8))  # sublane rows per grid step
    padded_rows = _round_up(rows, tile_s)
    n_tiles = padded_rows // tile_s
    total = padded_rows * 128

    # Lane-dense layout: pad and reshape (B, 1) -> (padded_rows, 128).
    x_flat = x.reshape(-1).astype(jnp.float32)
    x2d = jnp.pad(x_flat, (0, total - B)).reshape(padded_rows, 128)

    cost = pl.CostEstimate(
        flops=total * (2 * H + 2 * H * H + 2 * H + 2),
        transcendentals=0,
        bytes_accessed=2 * total * 4 + _N_PARAMS * 4,
    )

    out2d = pl.pallas_call(
        _mlp_kernel,
        out_shape=jax.ShapeDtypeStruct((padded_rows, 128), jnp.float32),
        grid=(n_tiles,),
        in_specs=[
            # All weights/biases: one small vector, resident in SMEM for every step.
            pl.BlockSpec(memory_space=pltpu.MemorySpace.SMEM),
            # Batch tile, pipelined over the grid.
            pl.BlockSpec((tile_s, 128), lambda i: (i, 0)),
        ],
        out_specs=pl.BlockSpec((tile_s, 128), lambda i: (i, 0)),  # lane-dense stores
        compiler_params=pltpu.CompilerParams(
            dimension_semantics=("parallel",),  # embarrassingly parallel batch axis
        ),
        cost_estimate=cost,
    )(packed_params, x2d)

    return out2d.reshape(-1)[:B].reshape(B, 1)


def init_params(key):
    """Deterministic init with PyTorch nn.Linear shapes (out_features, in_features)."""
    k1, k2, k3, k4, k5, k6 = jax.random.split(key, 6)
    return {
        "fc1_w": jax.random.normal(k1, (10, 1), jnp.float32) * 0.5,
        "fc1_b": jax.random.normal(k2, (10,), jnp.float32) * 0.1,
        "fc2_w": jax.random.normal(k3, (10, 10), jnp.float32) * 0.3,
        "fc2_b": jax.random.normal(k4, (10,), jnp.float32) * 0.1,
        "fc3_w": jax.random.normal(k5, (1, 10), jnp.float32) * 0.3,
        "fc3_b": jax.random.normal(k6, (1,), jnp.float32) * 0.1,
    }


def reference_forward(x, params):
    """Pure-JAX reference with exact nn.Linear semantics (y = x @ W.T + b)."""
    h1 = jnp.maximum(x @ params["fc1_w"].T + params["fc1_b"], 0.0)
    h2 = jnp.maximum(h1 @ params["fc2_w"].T + params["fc2_b"], 0.0)
    return h2 @ params["fc3_w"].T + params["fc3_b"]


if __name__ == "__main__":
    key = jax.random.PRNGKey(0)
    kp, kx1, kx2 = jax.random.split(key, 3)
    params = init_params(kp)
    packed = pack_params(params)

    # Small toy batch (matches the original module's usage).
    x_small = jax.random.normal(kx1, (8, 1), jnp.float32)
    out_small = jax.block_until_ready(intelligence_net_forward(x_small, packed))
    ref_small = reference_forward(x_small, params)
    assert out_small.shape == (8, 1)
    assert jnp.allclose(out_small, ref_small, atol=1e-5, rtol=1e-5), "small-batch mismatch"

    # Larger, non-multiple-of-tile batch to exercise padding + multi-step grid pipelining.
    x_big = jax.random.normal(kx2, (3000, 1), jnp.float32)
    out_big = jax.block_until_ready(
        intelligence_net_forward(x_big, packed, max_tile_rows=8))
    ref_big = reference_forward(x_big, params)
    assert out_big.shape == (3000, 1)
    assert jnp.allclose(out_big, ref_big, atol=1e-5, rtol=1e-5), "big-batch mismatch"

    print("KERNEL_OK")
</pallas_src>

<mosaic_0001>
module attributes {stable_mosaic.version = 11 : i64} {
  func.func @_mlp_kernel(%arg0: i32, %arg1: memref<141xf32, #tpu.memory_space<smem>>, %arg2: memref<8x128xf32, #tpu.memory_space<vmem>>, %arg3: memref<8x128xf32, #tpu.memory_space<vmem>>) attributes {dimension_semantics = [#tpu.dimension_semantics<parallel>], iteration_bounds = array<i64: 1>, scalar_prefetch = 0 : i64, scratch_operands = 0 : i64, tpu.core_type = #tpu.core_type<tc>, window_params = [{transform_indices = @transform_0, window_bounds = array<i64: 141>}, {transform_indices = @transform_1, window_bounds = array<i64: 8, 128>}, {transform_indices = @transform_2, window_bounds = array<i64: 8, 128>}]} {
    %c0 = arith.constant 0 : index
    %c0_0 = arith.constant 0 : index
    %0 = vector.load %arg2[%c0, %c0_0] : memref<8x128xf32, #tpu.memory_space<vmem>>, vector<8x128xf32>
    %c0_1 = arith.constant 0 : index
    %1 = memref.load %arg1[%c0_1] : memref<141xf32, #tpu.memory_space<smem>>
    %2 = vector.broadcast %1 : f32 to vector<8x128xf32>
    %3 = arith.mulf %0, %2 : vector<8x128xf32>
    %c10 = arith.constant 10 : index
    %4 = memref.load %arg1[%c10] : memref<141xf32, #tpu.memory_space<smem>>
    %5 = vector.broadcast %4 : f32 to vector<8x128xf32>
    %6 = arith.addf %3, %5 : vector<8x128xf32>
    %cst = arith.constant 0.000000e+00 : f32
    %7 = vector.broadcast %cst : f32 to vector<8x128xf32>
    %8 = arith.maximumf %6, %7 : vector<8x128xf32>
    %c1 = arith.constant 1 : index
    %9 = memref.load %arg1[%c1] : memref<141xf32, #tpu.memory_space<smem>>
    %10 = vector.broadcast %9 : f32 to vector<8x128xf32>
    %11 = arith.mulf %0, %10 : vector<8x128xf32>
    %c11 = arith.constant 11 : index
    %12 = memref.load %arg1[%c11] : memref<141xf32, #tpu.memory_space<smem>>
    %13 = vector.broadcast %12 : f32 to vector<8x128xf32>
    %14 = arith.addf %11, %13 : vector<8x128xf32>
    %cst_2 = arith.constant 0.000000e+00 : f32
    %15 = vector.broadcast %cst_2 : f32 to vector<8x128xf32>
    %16 = arith.maximumf %14, %15 : vector<8x128xf32>
    %c2 = arith.constant 2 : index
    %17 = memref.load %arg1[%c2] : memref<141xf32, #tpu.memory_space<smem>>
    %18 = vector.broadcast %17 : f32 to vector<8x128xf32>
    %19 = arith.mulf %0, %18 : vector<8x128xf32>
    %c12 = arith.constant 12 : index
    %20 = memref.load %arg1[%c12] : memref<141xf32, #tpu.memory_space<smem>>
    %21 = vector.broadcast %20 : f32 to vector<8x128xf32>
    %22 = arith.addf %19, %21 : vector<8x128xf32>
    %cst_3 = arith.constant 0.000000e+00 : f32
    %23 = vector.broadcast %cst_3 : f32 to vector<8x128xf32>
    %24 = arith.maximumf %22, %23 : vector<8x128xf32>
    %c3 = arith.constant 3 : index
    %25 = memref.load %arg1[%c3] : memref<141xf32, #tpu.memory_space<smem>>
    %26 = vector.broadcast %25 : f32 to vector<8x128xf32>
    %27 = arith.mulf %0, %26 : vector<8x128xf32>
    %c13 = arith.constant 13 : index
    %28 = memref.load %arg1[%c13] : memref<141xf32, #tpu.memory_space<smem>>
    %29 = vector.broadcast %28 : f32 to vector<8x128xf32>
    %30 = arith.addf %27, %29 : vector<8x128xf32>
    %cst_4 = arith.constant 0.000000e+00 : f32
    %31 = vector.broadcast %cst_4 : f32 to vector<8x128xf32>
    %32 = arith.maximumf %30, %31 : vector<8x128xf32>
    %c4 = arith.constant 4 : index
    %33 = memref.load %arg1[%c4] : memref<141xf32, #tpu.memory_space<smem>>
    %34 = vector.broadcast %33 : f32 to vector<8x128xf32>
    %35 = arith.mulf %0, %34 : vector<8x128xf32>
    %c14 = arith.constant 14 : index
    %36 = memref.load %arg1[%c14] : memref<141xf32, #tpu.memory_space<smem>>
    %37 = vector.broadcast %36 : f32 to vector<8x128xf32>
    %38 = arith.addf %35, %37 : vector<8x128xf32>
    %cst_5 = arith.constant 0.000000e+00 : f32
    %39 = vector.broadcast %cst_5 : f32 to vector<8x128xf32>
    %40 = arith.maximumf %38, %39 : vector<8x128xf32>
    %c5 = arith.constant 5 : index
    %41 = memref.load %arg1[%c5] : memref<141xf32, #tpu.memory_space<smem>>
    %42 = vector.broadcast %41 : f32 to vector<8x128xf32>
    %43 = arith.mulf %0, %42 : vector<8x128xf32>
    %c15 = arith.constant 15 : index
    %44 = memref.load %arg1[%c15] : memref<141xf32, #tpu.memory_space<smem>>
    %45 = vector.broadcast %44 : f32 to vector<8x128xf32>
    %46 = arith.addf %43, %45 : vector<8x128xf32>
    %cst_6 = arith.constant 0.000000e+00 : f32
    %47 = vector.broadcast %cst_6 : f32 to vector<8x128xf32>
    %48 = arith.maximumf %46, %47 : vector<8x128xf32>
    %c6 = arith.constant 6 : index
    %49 = memref.load %arg1[%c6] : memref<141xf32, #tpu.memory_space<smem>>
    %50 = vector.broadcast %49 : f32 to vector<8x128xf32>
    %51 = arith.mulf %0, %50 : vector<8x128xf32>
    %c16 = arith.constant 16 : index
    %52 = memref.load %arg1[%c16] : memref<141xf32, #tpu.memory_space<smem>>
    %53 = vector.broadcast %52 : f32 to vector<8x128xf32>
    %54 = arith.addf %51, %53 : vector<8x128xf32>
    %cst_7 = arith.constant 0.000000e+00 : f32
    %55 = vector.broadcast %cst_7 : f32 to vector<8x128xf32>
    %56 = arith.maximumf %54, %55 : vector<8x128xf32>
    %c7 = arith.constant 7 : index
    %57 = memref.load %arg1[%c7] : memref<141xf32, #tpu.memory_space<smem>>
    %58 = vector.broadcast %57 : f32 to vector<8x128xf32>
    %59 = arith.mulf %0, %58 : vector<8x128xf32>
    %c17 = arith.constant 17 : index
    %60 = memref.load %arg1[%c17] : memref<141xf32, #tpu.memory_space<smem>>
    %61 = vector.broadcast %60 : f32 to vector<8x128xf32>
    %62 = arith.addf %59, %61 : vector<8x128xf32>
    %cst_8 = arith.constant 0.000000e+00 : f32
    %63 = vector.broadcast %cst_8 : f32 to vector<8x128xf32>
    %64 = arith.maximumf %62, %63 : vector<8x128xf32>
    %c8 = arith.constant 8 : index
    %65 = memref.load %arg1[%c8] : memref<141xf32, #tpu.memory_space<smem>>
    %66 = vector.broadcast %65 : f32 to vector<8x128xf32>
    %67 = arith.mulf %0, %66 : vector<8x128xf32>
    %c18 = arith.constant 18 : index
    %68 = memref.load %arg1[%c18] : memref<141xf32, #tpu.memory_space<smem>>
    %69 = vector.broadcast %68 : f32 to vector<8x128xf32>
    %70 = arith.addf %67, %69 : vector<8x128xf32>
    %cst_9 = arith.constant 0.000000e+00 : f32
    %71 = vector.broadcast %cst_9 : f32 to vector<8x128xf32>
    %72 = arith.maximumf %70, %71 : vector<8x128xf32>
    %c9 = arith.constant 9 : index
    %73 = memref.load %arg1[%c9] : memref<141xf32, #tpu.memory_space<smem>>
    %74 = vector.broadcast %73 : f32 to vector<8x128xf32>
    %75 = arith.mulf %0, %74 : vector<8x128xf32>
    %c19 = arith.constant 19 : index
    %76 = memref.load %arg1[%c19] : memref<141xf32, #tpu.memory_space<smem>>
    %77 = vector.broadcast %76 : f32 to vector<8x128xf32>
    %78 = arith.addf %75, %77 : vector<8x128xf32>
    %cst_10 = arith.constant 0.000000e+00 : f32
    %79 = vector.broadcast %cst_10 : f32 to vector<8x128xf32>
    %80 = arith.maximumf %78, %79 : vector<8x128xf32>
    %c20 = arith.constant 20 : index
    %81 = memref.load %arg1[%c20] : memref<141xf32, #tpu.memory_space<smem>>
    %82 = vector.broadcast %81 : f32 to vector<8x128xf32>
    %83 = arith.mulf %8, %82 : vector<8x128xf32>
    %c21 = arith.constant 21 : index
    %84 = memref.load %arg1[%c21] : memref<141xf32, #tpu.memory_space<smem>>
    %85 = vector.broadcast %84 : f32 to vector<8x128xf32>
    %86 = arith.mulf %16, %85 : vector<8x128xf32>
    %87 = arith.addf %83, %86 : vector<8x128xf32>
    %c22 = arith.constant 22 : index
    %88 = memref.load %arg1[%c22] : memref<141xf32, #tpu.memory_space<smem>>
    %89 = vector.broadcast %88 : f32 to vector<8x128xf32>
    %90 = arith.mulf %24, %89 : vector<8x128xf32>
    %91 = arith.addf %87, %90 : vector<8x128xf32>
    %c23 = arith.constant 23 : index
    %92 = memref.load %arg1[%c23] : memref<141xf32, #tpu.memory_space<smem>>
    %93 = vector.broadcast %92 : f32 to vector<8x128xf32>
    %94 = arith.mulf %32, %93 : vector<8x128xf32>
    %95 = arith.addf %91, %94 : vector<8x128xf32>
    %c24 = arith.constant 24 : index
    %96 = memref.load %arg1[%c24] : memref<141xf32, #tpu.memory_space<smem>>
    %97 = vector.broadcast %96 : f32 to vector<8x128xf32>
    %98 = arith.mulf %40, %97 : vector<8x128xf32>
    %99 = arith.addf %95, %98 : vector<8x128xf32>
    %c25 = arith.constant 25 : index
    %100 = memref.load %arg1[%c25] : memref<141xf32, #tpu.memory_space<smem>>
    %101 = vector.broadcast %100 : f32 to vector<8x128xf32>
    %102 = arith.mulf %48, %101 : vector<8x128xf32>
    %103 = arith.addf %99, %102 : vector<8x128xf32>
    %c26 = arith.constant 26 : index
    %104 = memref.load %arg1[%c26] : memref<141xf32, #tpu.memory_space<smem>>
    %105 = vector.broadcast %104 : f32 to vector<8x128xf32>
    %106 = arith.mulf %56, %105 : vector<8x128xf32>
    %107 = arith.addf %103, %106 : vector<8x128xf32>
    %c27 = arith.constant 27 : index
    %108 = memref.load %arg1[%c27] : memref<141xf32, #tpu.memory_space<smem>>
    %109 = vector.broadcast %108 : f32 to vector<8x128xf32>
    %110 = arith.mulf %64, %109 : vector<8x128xf32>
    %111 = arith.addf %107, %110 : vector<8x128xf32>
    %c28 = arith.constant 28 : index
    %112 = memref.load %arg1[%c28] : memref<141xf32, #tpu.memory_space<smem>>
    %113 = vector.broadcast %112 : f32 to vector<8x128xf32>
    %114 = arith.mulf %72, %113 : vector<8x128xf32>
    %115 = arith.addf %111, %114 : vector<8x128xf32>
    %c29 = arith.constant 29 : index
    %116 = memref.load %arg1[%c29] : memref<141xf32, #tpu.memory_space<smem>>
    %117 = vector.broadcast %116 : f32 to vector<8x128xf32>
    %118 = arith.mulf %80, %117 : vector<8x128xf32>
    %119 = arith.addf %115, %118 : vector<8x128xf32>
    %c120 = arith.constant 120 : index
    %120 = memref.load %arg1[%c120] : memref<141xf32, #tpu.memory_space<smem>>
    %121 = vector.broadcast %120 : f32 to vector<8x128xf32>
    %122 = arith.addf %119, %121 : vector<8x128xf32>
    %cst_11 = arith.constant 0.000000e+00 : f32
    %123 = vector.broadcast %cst_11 : f32 to vector<8x128xf32>
    %124 = arith.maximumf %122, %123 : vector<8x128xf32>
    %c30 = arith.constant 30 : index
    %125 = memref.load %arg1[%c30] : memref<141xf32, #tpu.memory_space<smem>>
    %126 = vector.broadcast %125 : f32 to vector<8x128xf32>
    %127 = arith.mulf %8, %126 : vector<8x128xf32>
    %c31 = arith.constant 31 : index
    %128 = memref.load %arg1[%c31] : memref<141xf32, #tpu.memory_space<smem>>
    %129 = vector.broadcast %128 : f32 to vector<8x128xf32>
    %130 = arith.mulf %16, %129 : vector<8x128xf32>
    %131 = arith.addf %127, %130 : vector<8x128xf32>
    %c32 = arith.constant 32 : index
    %132 = memref.load %arg1[%c32] : memref<141xf32, #tpu.memory_space<smem>>
    %133 = vector.broadcast %132 : f32 to vector<8x128xf32>
    %134 = arith.mulf %24, %133 : vector<8x128xf32>
    %135 = arith.addf %131, %134 : vector<8x128xf32>
    %c33 = arith.constant 33 : index
    %136 = memref.load %arg1[%c33] : memref<141xf32, #tpu.memory_space<smem>>
    %137 = vector.broadcast %136 : f32 to vector<8x128xf32>
    %138 = arith.mulf %32, %137 : vector<8x128xf32>
    %139 = arith.addf %135, %138 : vector<8x128xf32>
    %c34 = arith.constant 34 : index
    %140 = memref.load %arg1[%c34] : memref<141xf32, #tpu.memory_space<smem>>
    %141 = vector.broadcast %140 : f32 to vector<8x128xf32>
    %142 = arith.mulf %40, %141 : vector<8x128xf32>
    %143 = arith.addf %139, %142 : vector<8x128xf32>
    %c35 = arith.constant 35 : index
    %144 = memref.load %arg1[%c35] : memref<141xf32, #tpu.memory_space<smem>>
    %145 = vector.broadcast %144 : f32 to vector<8x128xf32>
    %146 = arith.mulf %48, %145 : vector<8x128xf32>
    %147 = arith.addf %143, %146 : vector<8x128xf32>
    %c36 = arith.constant 36 : index
    %148 = memref.load %arg1[%c36] : memref<141xf32, #tpu.memory_space<smem>>
    %149 = vector.broadcast %148 : f32 to vector<8x128xf32>
    %150 = arith.mulf %56, %149 : vector<8x128xf32>
    %151 = arith.addf %147, %150 : vector<8x128xf32>
    %c37 = arith.constant 37 : index
    %152 = memref.load %arg1[%c37] : memref<141xf32, #tpu.memory_space<smem>>
    %153 = vector.broadcast %152 : f32 to vector<8x128xf32>
    %154 = arith.mulf %64, %153 : vector<8x128xf32>
    %155 = arith.addf %151, %154 : vector<8x128xf32>
    %c38 = arith.constant 38 : index
    %156 = memref.load %arg1[%c38] : memref<141xf32, #tpu.memory_space<smem>>
    %157 = vector.broadcast %156 : f32 to vector<8x128xf32>
    %158 = arith.mulf %72, %157 : vector<8x128xf32>
    %159 = arith.addf %155, %158 : vector<8x128xf32>
    %c39 = arith.constant 39 : index
    %160 = memref.load %arg1[%c39] : memref<141xf32, #tpu.memory_space<smem>>
    %161 = vector.broadcast %160 : f32 to vector<8x128xf32>
    %162 = arith.mulf %80, %161 : vector<8x128xf32>
    %163 = arith.addf %159, %162 : vector<8x128xf32>
    %c121 = arith.constant 121 : index
    %164 = memref.load %arg1[%c121] : memref<141xf32, #tpu.memory_space<smem>>
    %165 = vector.broadcast %164 : f32 to vector<8x128xf32>
    %166 = arith.addf %163, %165 : vector<8x128xf32>
    %cst_12 = arith.constant 0.000000e+00 : f32
    %167 = vector.broadcast %cst_12 : f32 to vector<8x128xf32>
    %168 = arith.maximumf %166, %167 : vector<8x128xf32>
    %c40 = arith.constant 40 : index
    %169 = memref.load %arg1[%c40] : memref<141xf32, #tpu.memory_space<smem>>
    %170 = vector.broadcast %169 : f32 to vector<8x128xf32>
    %171 = arith.mulf %8, %170 : vector<8x128xf32>
    %c41 = arith.constant 41 : index
    %172 = memref.load %arg1[%c41] : memref<141xf32, #tpu.memory_space<smem>>
    %173 = vector.broadcast %172 : f32 to vector<8x128xf32>
    %174 = arith.mulf %16, %173 : vector<8x128xf32>
    %175 = arith.addf %171, %174 : vector<8x128xf32>
    %c42 = arith.constant 42 : index
    %176 = memref.load %arg1[%c42] : memref<141xf32, #tpu.memory_space<smem>>
    %177 = vector.broadcast %176 : f32 to vector<8x128xf32>
    %178 = arith.mulf %24, %177 : vector<8x128xf32>
    %179 = arith.addf %175, %178 : vector<8x128xf32>
    %c43 = arith.constant 43 : index
    %180 = memref.load %arg1[%c43] : memref<141xf32, #tpu.memory_space<smem>>
    %181 = vector.broadcast %180 : f32 to vector<8x128xf32>
    %182 = arith.mulf %32, %181 : vector<8x128xf32>
    %183 = arith.addf %179, %182 : vector<8x128xf32>
    %c44 = arith.constant 44 : index
    %184 = memref.load %arg1[%c44] : memref<141xf32, #tpu.memory_space<smem>>
    %185 = vector.broadcast %184 : f32 to vector<8x128xf32>
    %186 = arith.mulf %40, %185 : vector<8x128xf32>
    %187 = arith.addf %183, %186 : vector<8x128xf32>
    %c45 = arith.constant 45 : index
    %188 = memref.load %arg1[%c45] : memref<141xf32, #tpu.memory_space<smem>>
    %189 = vector.broadcast %188 : f32 to vector<8x128xf32>
    %190 = arith.mulf %48, %189 : vector<8x128xf32>
    %191 = arith.addf %187, %190 : vector<8x128xf32>
    %c46 = arith.constant 46 : index
    %192 = memref.load %arg1[%c46] : memref<141xf32, #tpu.memory_space<smem>>
    %193 = vector.broadcast %192 : f32 to vector<8x128xf32>
    %194 = arith.mulf %56, %193 : vector<8x128xf32>
    %195 = arith.addf %191, %194 : vector<8x128xf32>
    %c47 = arith.constant 47 : index
    %196 = memref.load %arg1[%c47] : memref<141xf32, #tpu.memory_space<smem>>
    %197 = vector.broadcast %196 : f32 to vector<8x128xf32>
    %198 = arith.mulf %64, %197 : vector<8x128xf32>
    %199 = arith.addf %195, %198 : vector<8x128xf32>
    %c48 = arith.constant 48 : index
    %200 = memref.load %arg1[%c48] : memref<141xf32, #tpu.memory_space<smem>>
    %201 = vector.broadcast %200 : f32 to vector<8x128xf32>
    %202 = arith.mulf %72, %201 : vector<8x128xf32>
    %203 = arith.addf %199, %202 : vector<8x128xf32>
    %c49 = arith.constant 49 : index
    %204 = memref.load %arg1[%c49] : memref<141xf32, #tpu.memory_space<smem>>
    %205 = vector.broadcast %204 : f32 to vector<8x128xf32>
    %206 = arith.mulf %80, %205 : vector<8x128xf32>
    %207 = arith.addf %203, %206 : vector<8x128xf32>
    %c122 = arith.constant 122 : index
    %208 = memref.load %arg1[%c122] : memref<141xf32, #tpu.memory_space<smem>>
    %209 = vector.broadcast %208 : f32 to vector<8x128xf32>
    %210 = arith.addf %207, %209 : vector<8x128xf32>
    %cst_13 = arith.constant 0.000000e+00 : f32
    %211 = vector.broadcast %cst_13 : f32 to vector<8x128xf32>
    %212 = arith.maximumf %210, %211 : vector<8x128xf32>
    %c50 = arith.constant 50 : index
    %213 = memref.load %arg1[%c50] : memref<141xf32, #tpu.memory_space<smem>>
    %214 = vector.broadcast %213 : f32 to vector<8x128xf32>
    %215 = arith.mulf %8, %214 : vector<8x128xf32>
    %c51 = arith.constant 51 : index
    %216 = memref.load %arg1[%c51] : memref<141xf32, #tpu.memory_space<smem>>
    %217 = vector.broadcast %216 : f32 to vector<8x128xf32>
    %218 = arith.mulf %16, %217 : vector<8x128xf32>
    %219 = arith.addf %215, %218 : vector<8x128xf32>
    %c52 = arith.constant 52 : index
    %220 = memref.load %arg1[%c52] : memref<141xf32, #tpu.memory_space<smem>>
    %221 = vector.broadcast %220 : f32 to vector<8x128xf32>
    %222 = arith.mulf %24, %221 : vector<8x128xf32>
    %223 = arith.addf %219, %222 : vector<8x128xf32>
    %c53 = arith.constant 53 : index
    %224 = memref.load %arg1[%c53] : memref<141xf32, #tpu.memory_space<smem>>
    %225 = vector.broadcast %224 : f32 to vector<8x128xf32>
    %226 = arith.mulf %32, %225 : vector<8x128xf32>
    %227 = arith.addf %223, %226 : vector<8x128xf32>
    %c54 = arith.constant 54 : index
    %228 = memref.load %arg1[%c54] : memref<141xf32, #tpu.memory_space<smem>>
    %229 = vector.broadcast %228 : f32 to vector<8x128xf32>
    %230 = arith.mulf %40, %229 : vector<8x128xf32>
    %231 = arith.addf %227, %230 : vector<8x128xf32>
    %c55 = arith.constant 55 : index
    %232 = memref.load %arg1[%c55] : memref<141xf32, #tpu.memory_space<smem>>
    %233 = vector.broadcast %232 : f32 to vector<8x128xf32>
    %234 = arith.mulf %48, %233 : vector<8x128xf32>
    %235 = arith.addf %231, %234 : vector<8x128xf32>
    %c56 = arith.constant 56 : index
    %236 = memref.load %arg1[%c56] : memref<141xf32, #tpu.memory_space<smem>>
    %237 = vector.broadcast %236 : f32 to vector<8x128xf32>
    %238 = arith.mulf %56, %237 : vector<8x128xf32>
    %239 = arith.addf %235, %238 : vector<8x128xf32>
    %c57 = arith.constant 57 : index
    %240 = memref.load %arg1[%c57] : memref<141xf32, #tpu.memory_space<smem>>
    %241 = vector.broadcast %240 : f32 to vector<8x128xf32>
    %242 = arith.mulf %64, %241 : vector<8x128xf32>
    %243 = arith.addf %239, %242 : vector<8x128xf32>
    %c58 = arith.constant 58 : index
    %244 = memref.load %arg1[%c58] : memref<141xf32, #tpu.memory_space<smem>>
    %245 = vector.broadcast %244 : f32 to vector<8x128xf32>
    %246 = arith.mulf %72, %245 : vector<8x128xf32>
    %247 = arith.addf %243, %246 : vector<8x128xf32>
    %c59 = arith.constant 59 : index
    %248 = memref.load %arg1[%c59] : memref<141xf32, #tpu.memory_space<smem>>
    %249 = vector.broadcast %248 : f32 to vector<8x128xf32>
    %250 = arith.mulf %80, %249 : vector<8x128xf32>
    %251 = arith.addf %247, %250 : vector<8x128xf32>
    %c123 = arith.constant 123 : index
    %252 = memref.load %arg1[%c123] : memref<141xf32, #tpu.memory_space<smem>>
    %253 = vector.broadcast %252 : f32 to vector<8x128xf32>
    %254 = arith.addf %251, %253 : vector<8x128xf32>
    %cst_14 = arith.constant 0.000000e+00 : f32
    %255 = vector.broadcast %cst_14 : f32 to vector<8x128xf32>
    %256 = arith.maximumf %254, %255 : vector<8x128xf32>
    %c60 = arith.constant 60 : index
    %257 = memref.load %arg1[%c60] : memref<141xf32, #tpu.memory_space<smem>>
    %258 = vector.broadcast %257 : f32 to vector<8x128xf32>
    %259 = arith.mulf %8, %258 : vector<8x128xf32>
    %c61 = arith.constant 61 : index
    %260 = memref.load %arg1[%c61] : memref<141xf32, #tpu.memory_space<smem>>
    %261 = vector.broadcast %260 : f32 to vector<8x128xf32>
    %262 = arith.mulf %16, %261 : vector<8x128xf32>
    %263 = arith.addf %259, %262 : vector<8x128xf32>
    %c62 = arith.constant 62 : index
    %264 = memref.load %arg1[%c62] : memref<141xf32, #tpu.memory_space<smem>>
    %265 = vector.broadcast %264 : f32 to vector<8x128xf32>
    %266 = arith.mulf %24, %265 : vector<8x128xf32>
    %267 = arith.addf %263, %266 : vector<8x128xf32>
    %c63 = arith.constant 63 : index
    %268 = memref.load %arg1[%c63] : memref<141xf32, #tpu.memory_space<smem>>
    %269 = vector.broadcast %268 : f32 to vector<8x128xf32>
    %270 = arith.mulf %32, %269 : vector<8x128xf32>
    %271 = arith.addf %267, %270 : vector<8x128xf32>
    %c64 = arith.constant 64 : index
    %272 = memref.load %arg1[%c64] : memref<141xf32, #tpu.memory_space<smem>>
    %273 = vector.broadcast %272 : f32 to vector<8x128xf32>
    %274 = arith.mulf %40, %273 : vector<8x128xf32>
    %275 = arith.addf %271, %274 : vector<8x128xf32>
    %c65 = arith.constant 65 : index
    %276 = memref.load %arg1[%c65] : memref<141xf32, #tpu.memory_space<smem>>
    %277 = vector.broadcast %276 : f32 to vector<8x128xf32>
    %278 = arith.mulf %48, %277 : vector<8x128xf32>
    %279 = arith.addf %275, %278 : vector<8x128xf32>
    %c66 = arith.constant 66 : index
    %280 = memref.load %arg1[%c66] : memref<141xf32, #tpu.memory_space<smem>>
    %281 = vector.broadcast %280 : f32 to vector<8x128xf32>
    %282 = arith.mulf %56, %281 : vector<8x128xf32>
    %283 = arith.addf %279, %282 : vector<8x128xf32>
    %c67 = arith.constant 67 : index
    %284 = memref.load %arg1[%c67] : memref<141xf32, #tpu.memory_space<smem>>
    %285 = vector.broadcast %284 : f32 to vector<8x128xf32>
    %286 = arith.mulf %64, %285 : vector<8x128xf32>
    %287 = arith.addf %283, %286 : vector<8x128xf32>
    %c68 = arith.constant 68 : index
    %288 = memref.load %arg1[%c68] : memref<141xf32, #tpu.memory_space<smem>>
    %289 = vector.broadcast %288 : f32 to vector<8x128xf32>
    %290 = arith.mulf %72, %289 : vector<8x128xf32>
    %291 = arith.addf %287, %290 : vector<8x128xf32>
    %c69 = arith.constant 69 : index
    %292 = memref.load %arg1[%c69] : memref<141xf32, #tpu.memory_space<smem>>
    %293 = vector.broadcast %292 : f32 to vector<8x128xf32>
    %294 = arith.mulf %80, %293 : vector<8x128xf32>
    %295 = arith.addf %291, %294 : vector<8x128xf32>
    %c124 = arith.constant 124 : index
    %296 = memref.load %arg1[%c124] : memref<141xf32, #tpu.memory_space<smem>>
    %297 = vector.broadcast %296 : f32 to vector<8x128xf32>
    %298 = arith.addf %295, %297 : vector<8x128xf32>
    %cst_15 = arith.constant 0.000000e+00 : f32
    %299 = vector.broadcast %cst_15 : f32 to vector<8x128xf32>
    %300 = arith.maximumf %298, %299 : vector<8x128xf32>
    %c70 = arith.constant 70 : index
    %301 = memref.load %arg1[%c70] : memref<141xf32, #tpu.memory_space<smem>>
    %302 = vector.broadcast %301 : f32 to vector<8x128xf32>
    %303 = arith.mulf %8, %302 : vector<8x128xf32>
    %c71 = arith.constant 71 : index
    %304 = memref.load %arg1[%c71] : memref<141xf32, #tpu.memory_space<smem>>
    %305 = vector.broadcast %304 : f32 to vector<8x128xf32>
    %306 = arith.mulf %16, %305 : vector<8x128xf32>
    %307 = arith.addf %303, %306 : vector<8x128xf32>
    %c72 = arith.constant 72 : index
    %308 = memref.load %arg1[%c72] : memref<141xf32, #tpu.memory_space<smem>>
    %309 = vector.broadcast %308 : f32 to vector<8x128xf32>
    %310 = arith.mulf %24, %309 : vector<8x128xf32>
    %311 = arith.addf %307, %310 : vector<8x128xf32>
    %c73 = arith.constant 73 : index
    %312 = memref.load %arg1[%c73] : memref<141xf32, #tpu.memory_space<smem>>
    %313 = vector.broadcast %312 : f32 to vector<8x128xf32>
    %314 = arith.mulf %32, %313 : vector<8x128xf32>
    %315 = arith.addf %311, %314 : vector<8x128xf32>
    %c74 = arith.constant 74 : index
    %316 = memref.load %arg1[%c74] : memref<141xf32, #tpu.memory_space<smem>>
    %317 = vector.broadcast %316 : f32 to vector<8x128xf32>
    %318 = arith.mulf %40, %317 : vector<8x128xf32>
    %319 = arith.addf %315, %318 : vector<8x128xf32>
    %c75 = arith.constant 75 : index
    %320 = memref.load %arg1[%c75] : memref<141xf32, #tpu.memory_space<smem>>
    %321 = vector.broadcast %320 : f32 to vector<8x128xf32>
    %322 = arith.mulf %48, %321 : vector<8x128xf32>
    %323 = arith.addf %319, %322 : vector<8x128xf32>
    %c76 = arith.constant 76 : index
    %324 = memref.load %arg1[%c76] : memref<141xf32, #tpu.memory_space<smem>>
    %325 = vector.broadcast %324 : f32 to vector<8x128xf32>
    %326 = arith.mulf %56, %325 : vector<8x128xf32>
    %327 = arith.addf %323, %326 : vector<8x128xf32>
    %c77 = arith.constant 77 : index
    %328 = memref.load %arg1[%c77] : memref<141xf32, #tpu.memory_space<smem>>
    %329 = vector.broadcast %328 : f32 to vector<8x128xf32>
    %330 = arith.mulf %64, %329 : vector<8x128xf32>
    %331 = arith.addf %327, %330 : vector<8x128xf32>
    %c78 = arith.constant 78 : index
    %332 = memref.load %arg1[%c78] : memref<141xf32, #tpu.memory_space<smem>>
    %333 = vector.broadcast %332 : f32 to vector<8x128xf32>
    %334 = arith.mulf %72, %333 : vector<8x128xf32>
    %335 = arith.addf %331, %334 : vector<8x128xf32>
    %c79 = arith.constant 79 : index
    %336 = memref.load %arg1[%c79] : memref<141xf32, #tpu.memory_space<smem>>
    %337 = vector.broadcast %336 : f32 to vector<8x128xf32>
    %338 = arith.mulf %80, %337 : vector<8x128xf32>
    %339 = arith.addf %335, %338 : vector<8x128xf32>
    %c125 = arith.constant 125 : index
    %340 = memref.load %arg1[%c125] : memref<141xf32, #tpu.memory_space<smem>>
    %341 = vector.broadcast %340 : f32 to vector<8x128xf32>
    %342 = arith.addf %339, %341 : vector<8x128xf32>
    %cst_16 = arith.constant 0.000000e+00 : f32
    %343 = vector.broadcast %cst_16 : f32 to vector<8x128xf32>
    %344 = arith.maximumf %342, %343 : vector<8x128xf32>
    %c80 = arith.constant 80 : index
    %345 = memref.load %arg1[%c80] : memref<141xf32, #tpu.memory_space<smem>>
    %346 = vector.broadcast %345 : f32 to vector<8x128xf32>
    %347 = arith.mulf %8, %346 : vector<8x128xf32>
    %c81 = arith.constant 81 : index
    %348 = memref.load %arg1[%c81] : memref<141xf32, #tpu.memory_space<smem>>
    %349 = vector.broadcast %348 : f32 to vector<8x128xf32>
    %350 = arith.mulf %16, %349 : vector<8x128xf32>
    %351 = arith.addf %347, %350 : vector<8x128xf32>
    %c82 = arith.constant 82 : index
    %352 = memref.load %arg1[%c82] : memref<141xf32, #tpu.memory_space<smem>>
    %353 = vector.broadcast %352 : f32 to vector<8x128xf32>
    %354 = arith.mulf %24, %353 : vector<8x128xf32>
    %355 = arith.addf %351, %354 : vector<8x128xf32>
    %c83 = arith.constant 83 : index
    %356 = memref.load %arg1[%c83] : memref<141xf32, #tpu.memory_space<smem>>
    %357 = vector.broadcast %356 : f32 to vector<8x128xf32>
    %358 = arith.mulf %32, %357 : vector<8x128xf32>
    %359 = arith.addf %355, %358 : vector<8x128xf32>
    %c84 = arith.constant 84 : index
    %360 = memref.load %arg1[%c84] : memref<141xf32, #tpu.memory_space<smem>>
    %361 = vector.broadcast %360 : f32 to vector<8x128xf32>
    %362 = arith.mulf %40, %361 : vector<8x128xf32>
    %363 = arith.addf %359, %362 : vector<8x128xf32>
    %c85 = arith.constant 85 : index
    %364 = memref.load %arg1[%c85] : memref<141xf32, #tpu.memory_space<smem>>
    %365 = vector.broadcast %364 : f32 to vector<8x128xf32>
    %366 = arith.mulf %48, %365 : vector<8x128xf32>
    %367 = arith.addf %363, %366 : vector<8x128xf32>
    %c86 = arith.constant 86 : index
    %368 = memref.load %arg1[%c86] : memref<141xf32, #tpu.memory_space<smem>>
    %369 = vector.broadcast %368 : f32 to vector<8x128xf32>
    %370 = arith.mulf %56, %369 : vector<8x128xf32>
    %371 = arith.addf %367, %370 : vector<8x128xf32>
    %c87 = arith.constant 87 : index
    %372 = memref.load %arg1[%c87] : memref<141xf32, #tpu.memory_space<smem>>
    %373 = vector.broadcast %372 : f32 to vector<8x128xf32>
    %374 = arith.mulf %64, %373 : vector<8x128xf32>
    %375 = arith.addf %371, %374 : vector<8x128xf32>
    %c88 = arith.constant 88 : index
    %376 = memref.load %arg1[%c88] : memref<141xf32, #tpu.memory_space<smem>>
    %377 = vector.broadcast %376 : f32 to vector<8x128xf32>
    %378 = arith.mulf %72, %377 : vector<8x128xf32>
    %379 = arith.addf %375, %378 : vector<8x128xf32>
    %c89 = arith.constant 89 : index
    %380 = memref.load %arg1[%c89] : memref<141xf32, #tpu.memory_space<smem>>
    %381 = vector.broadcast %380 : f32 to vector<8x128xf32>
    %382 = arith.mulf %80, %381 : vector<8x128xf32>
    %383 = arith.addf %379, %382 : vector<8x128xf32>
    %c126 = arith.constant 126 : index
    %384 = memref.load %arg1[%c126] : memref<141xf32, #tpu.memory_space<smem>>
    %385 = vector.broadcast %384 : f32 to vector<8x128xf32>
    %386 = arith.addf %383, %385 : vector<8x128xf32>
    %cst_17 = arith.constant 0.000000e+00 : f32
    %387 = vector.broadcast %cst_17 : f32 to vector<8x128xf32>
    %388 = arith.maximumf %386, %387 : vector<8x128xf32>
    %c90 = arith.constant 90 : index
    %389 = memref.load %arg1[%c90] : memref<141xf32, #tpu.memory_space<smem>>
    %390 = vector.broadcast %389 : f32 to vector<8x128xf32>
    %391 = arith.mulf %8, %390 : vector<8x128xf32>
    %c91 = arith.constant 91 : index
    %392 = memref.load %arg1[%c91] : memref<141xf32, #tpu.memory_space<smem>>
    %393 = vector.broadcast %392 : f32 to vector<8x128xf32>
    %394 = arith.mulf %16, %393 : vector<8x128xf32>
    %395 = arith.addf %391, %394 : vector<8x128xf32>
    %c92 = arith.constant 92 : index
    %396 = memref.load %arg1[%c92] : memref<141xf32, #tpu.memory_space<smem>>
    %397 = vector.broadcast %396 : f32 to vector<8x128xf32>
    %398 = arith.mulf %24, %397 : vector<8x128xf32>
    %399 = arith.addf %395, %398 : vector<8x128xf32>
    %c93 = arith.constant 93 : index
    %400 = memref.load %arg1[%c93] : memref<141xf32, #tpu.memory_space<smem>>
    %401 = vector.broadcast %400 : f32 to vector<8x128xf32>
    %402 = arith.mulf %32, %401 : vector<8x128xf32>
    %403 = arith.addf %399, %402 : vector<8x128xf32>
    %c94 = arith.constant 94 : index
    %404 = memref.load %arg1[%c94] : memref<141xf32, #tpu.memory_space<smem>>
    %405 = vector.broadcast %404 : f32 to vector<8x128xf32>
    %406 = arith.mulf %40, %405 : vector<8x128xf32>
    %407 = arith.addf %403, %406 : vector<8x128xf32>
    %c95 = arith.constant 95 : index
    %408 = memref.load %arg1[%c95] : memref<141xf32, #tpu.memory_space<smem>>
    %409 = vector.broadcast %408 : f32 to vector<8x128xf32>
    %410 = arith.mulf %48, %409 : vector<8x128xf32>
    %411 = arith.addf %407, %410 : vector<8x128xf32>
    %c96 = arith.constant 96 : index
    %412 = memref.load %arg1[%c96] : memref<141xf32, #tpu.memory_space<smem>>
    %413 = vector.broadcast %412 : f32 to vector<8x128xf32>
    %414 = arith.mulf %56, %413 : vector<8x128xf32>
    %415 = arith.addf %411, %414 : vector<8x128xf32>
    %c97 = arith.constant 97 : index
    %416 = memref.load %arg1[%c97] : memref<141xf32, #tpu.memory_space<smem>>
    %417 = vector.broadcast %416 : f32 to vector<8x128xf32>
    %418 = arith.mulf %64, %417 : vector<8x128xf32>
    %419 = arith.addf %415, %418 : vector<8x128xf32>
    %c98 = arith.constant 98 : index
    %420 = memref.load %arg1[%c98] : memref<141xf32, #tpu.memory_space<smem>>
    %421 = vector.broadcast %420 : f32 to vector<8x128xf32>
    %422 = arith.mulf %72, %421 : vector<8x128xf32>
    %423 = arith.addf %419, %422 : vector<8x128xf32>
    %c99 = arith.constant 99 : index
    %424 = memref.load %arg1[%c99] : memref<141xf32, #tpu.memory_space<smem>>
    %425 = vector.broadcast %424 : f32 to vector<8x128xf32>
    %426 = arith.mulf %80, %425 : vector<8x128xf32>
    %427 = arith.addf %423, %426 : vector<8x128xf32>
    %c127 = arith.constant 127 : index
    %428 = memref.load %arg1[%c127] : memref<141xf32, #tpu.memory_space<smem>>
    %429 = vector.broadcast %428 : f32 to vector<8x128xf32>
    %430 = arith.addf %427, %429 : vector<8x128xf32>
    %cst_18 = arith.constant 0.000000e+00 : f32
    %431 = vector.broadcast %cst_18 : f32 to vector<8x128xf32>
    %432 = arith.maximumf %430, %431 : vector<8x128xf32>
    %c100 = arith.constant 100 : index
    %433 = memref.load %arg1[%c100] : memref<141xf32, #tpu.memory_space<smem>>
    %434 = vector.broadcast %433 : f32 to vector<8x128xf32>
    %435 = arith.mulf %8, %434 : vector<8x128xf32>
    %c101 = arith.constant 101 : index
    %436 = memref.load %arg1[%c101] : memref<141xf32, #tpu.memory_space<smem>>
    %437 = vector.broadcast %436 : f32 to vector<8x128xf32>
    %438 = arith.mulf %16, %437 : vector<8x128xf32>
    %439 = arith.addf %435, %438 : vector<8x128xf32>
    %c102 = arith.constant 102 : index
    %440 = memref.load %arg1[%c102] : memref<141xf32, #tpu.memory_space<smem>>
    %441 = vector.broadcast %440 : f32 to vector<8x128xf32>
    %442 = arith.mulf %24, %441 : vector<8x128xf32>
    %443 = arith.addf %439, %442 : vector<8x128xf32>
    %c103 = arith.constant 103 : index
    %444 = memref.load %arg1[%c103] : memref<141xf32, #tpu.memory_space<smem>>
    %445 = vector.broadcast %444 : f32 to vector<8x128xf32>
    %446 = arith.mulf %32, %445 : vector<8x128xf32>
    %447 = arith.addf %443, %446 : vector<8x128xf32>
    %c104 = arith.constant 104 : index
    %448 = memref.load %arg1[%c104] : memref<141xf32, #tpu.memory_space<smem>>
    %449 = vector.broadcast %448 : f32 to vector<8x128xf32>
    %450 = arith.mulf %40, %449 : vector<8x128xf32>
    %451 = arith.addf %447, %450 : vector<8x128xf32>
    %c105 = arith.constant 105 : index
    %452 = memref.load %arg1[%c105] : memref<141xf32, #tpu.memory_space<smem>>
    %453 = vector.broadcast %452 : f32 to vector<8x128xf32>
    %454 = arith.mulf %48, %453 : vector<8x128xf32>
    %455 = arith.addf %451, %454 : vector<8x128xf32>
    %c106 = arith.constant 106 : index
    %456 = memref.load %arg1[%c106] : memref<141xf32, #tpu.memory_space<smem>>
    %457 = vector.broadcast %456 : f32 to vector<8x128xf32>
    %458 = arith.mulf %56, %457 : vector<8x128xf32>
    %459 = arith.addf %455, %458 : vector<8x128xf32>
    %c107 = arith.constant 107 : index
    %460 = memref.load %arg1[%c107] : memref<141xf32, #tpu.memory_space<smem>>
    %461 = vector.broadcast %460 : f32 to vector<8x128xf32>
    %462 = arith.mulf %64, %461 : vector<8x128xf32>
    %463 = arith.addf %459, %462 : vector<8x128xf32>
    %c108 = arith.constant 108 : index
    %464 = memref.load %arg1[%c108] : memref<141xf32, #tpu.memory_space<smem>>
    %465 = vector.broadcast %464 : f32 to vector<8x128xf32>
    %466 = arith.mulf %72, %465 : vector<8x128xf32>
    %467 = arith.addf %463, %466 : vector<8x128xf32>
    %c109 = arith.constant 109 : index
    %468 = memref.load %arg1[%c109] : memref<141xf32, #tpu.memory_space<smem>>
    %469 = vector.broadcast %468 : f32 to vector<8x128xf32>
    %470 = arith.mulf %80, %469 : vector<8x128xf32>
    %471 = arith.addf %467, %470 : vector<8x128xf32>
    %c128 = arith.constant 128 : index
    %472 = memref.load %arg1[%c128] : memref<141xf32, #tpu.memory_space<smem>>
    %473 = vector.broadcast %472 : f32 to vector<8x128xf32>
    %474 = arith.addf %471, %473 : vector<8x128xf32>
    %cst_19 = arith.constant 0.000000e+00 : f32
    %475 = vector.broadcast %cst_19 : f32 to vector<8x128xf32>
    %476 = arith.maximumf %474, %475 : vector<8x128xf32>
    %c110 = arith.constant 110 : index
    %477 = memref.load %arg1[%c110] : memref<141xf32, #tpu.memory_space<smem>>
    %478 = vector.broadcast %477 : f32 to vector<8x128xf32>
    %479 = arith.mulf %8, %478 : vector<8x128xf32>
    %c111 = arith.constant 111 : index
    %480 = memref.load %arg1[%c111] : memref<141xf32, #tpu.memory_space<smem>>
    %481 = vector.broadcast %480 : f32 to vector<8x128xf32>
    %482 = arith.mulf %16, %481 : vector<8x128xf32>
    %483 = arith.addf %479, %482 : vector<8x128xf32>
    %c112 = arith.constant 112 : index
    %484 = memref.load %arg1[%c112] : memref<141xf32, #tpu.memory_space<smem>>
    %485 = vector.broadcast %484 : f32 to vector<8x128xf32>
    %486 = arith.mulf %24, %485 : vector<8x128xf32>
    %487 = arith.addf %483, %486 : vector<8x128xf32>
    %c113 = arith.constant 113 : index
    %488 = memref.load %arg1[%c113] : memref<141xf32, #tpu.memory_space<smem>>
    %489 = vector.broadcast %488 : f32 to vector<8x128xf32>
    %490 = arith.mulf %32, %489 : vector<8x128xf32>
    %491 = arith.addf %487, %490 : vector<8x128xf32>
    %c114 = arith.constant 114 : index
    %492 = memref.load %arg1[%c114] : memref<141xf32, #tpu.memory_space<smem>>
    %493 = vector.broadcast %492 : f32 to vector<8x128xf32>
    %494 = arith.mulf %40, %493 : vector<8x128xf32>
    %495 = arith.addf %491, %494 : vector<8x128xf32>
    %c115 = arith.constant 115 : index
    %496 = memref.load %arg1[%c115] : memref<141xf32, #tpu.memory_space<smem>>
    %497 = vector.broadcast %496 : f32 to vector<8x128xf32>
    %498 = arith.mulf %48, %497 : vector<8x128xf32>
    %499 = arith.addf %495, %498 : vector<8x128xf32>
    %c116 = arith.constant 116 : index
    %500 = memref.load %arg1[%c116] : memref<141xf32, #tpu.memory_space<smem>>
    %501 = vector.broadcast %500 : f32 to vector<8x128xf32>
    %502 = arith.mulf %56, %501 : vector<8x128xf32>
    %503 = arith.addf %499, %502 : vector<8x128xf32>
    %c117 = arith.constant 117 : index
    %504 = memref.load %arg1[%c117] : memref<141xf32, #tpu.memory_space<smem>>
    %505 = vector.broadcast %504 : f32 to vector<8x128xf32>
    %506 = arith.mulf %64, %505 : vector<8x128xf32>
    %507 = arith.addf %503, %506 : vector<8x128xf32>
    %c118 = arith.constant 118 : index
    %508 = memref.load %arg1[%c118] : memref<141xf32, #tpu.memory_space<smem>>
    %509 = vector.broadcast %508 : f32 to vector<8x128xf32>
    %510 = arith.mulf %72, %509 : vector<8x128xf32>
    %511 = arith.addf %507, %510 : vector<8x128xf32>
    %c119 = arith.constant 119 : index
    %512 = memref.load %arg1[%c119] : memref<141xf32, #tpu.memory_space<smem>>
    %513 = vector.broadcast %512 : f32 to vector<8x128xf32>
    %514 = arith.mulf %80, %513 : vector<8x128xf32>
    %515 = arith.addf %511, %514 : vector<8x128xf32>
    %c129 = arith.constant 129 : index
    %516 = memref.load %arg1[%c129] : memref<141xf32, #tpu.memory_space<smem>>
    %517 = vector.broadcast %516 : f32 to vector<8x128xf32>
    %518 = arith.addf %515, %517 : vector<8x128xf32>
    %cst_20 = arith.constant 0.000000e+00 : f32
    %519 = vector.broadcast %cst_20 : f32 to vector<8x128xf32>
    %520 = arith.maximumf %518, %519 : vector<8x128xf32>
    %c130 = arith.constant 130 : index
    %521 = memref.load %arg1[%c130] : memref<141xf32, #tpu.memory_space<smem>>
    %522 = vector.broadcast %521 : f32 to vector<8x128xf32>
    %523 = arith.mulf %124, %522 : vector<8x128xf32>
    %c131 = arith.constant 131 : index
    %524 = memref.load %arg1[%c131] : memref<141xf32, #tpu.memory_space<smem>>
    %525 = vector.broadcast %524 : f32 to vector<8x128xf32>
    %526 = arith.mulf %168, %525 : vector<8x128xf32>
    %527 = arith.addf %523, %526 : vector<8x128xf32>
    %c132 = arith.constant 132 : index
    %528 = memref.load %arg1[%c132] : memref<141xf32, #tpu.memory_space<smem>>
    %529 = vector.broadcast %528 : f32 to vector<8x128xf32>
    %530 = arith.mulf %212, %529 : vector<8x128xf32>
    %531 = arith.addf %527, %530 : vector<8x128xf32>
    %c133 = arith.constant 133 : index
    %532 = memref.load %arg1[%c133] : memref<141xf32, #tpu.memory_space<smem>>
    %533 = vector.broadcast %532 : f32 to vector<8x128xf32>
    %534 = arith.mulf %256, %533 : vector<8x128xf32>
    %535 = arith.addf %531, %534 : vector<8x128xf32>
    %c134 = arith.constant 134 : index
    %536 = memref.load %arg1[%c134] : memref<141xf32, #tpu.memory_space<smem>>
    %537 = vector.broadcast %536 : f32 to vector<8x128xf32>
    %538 = arith.mulf %300, %537 : vector<8x128xf32>
    %539 = arith.addf %535, %538 : vector<8x128xf32>
    %c135 = arith.constant 135 : index
    %540 = memref.load %arg1[%c135] : memref<141xf32, #tpu.memory_space<smem>>
    %541 = vector.broadcast %540 : f32 to vector<8x128xf32>
    %542 = arith.mulf %344, %541 : vector<8x128xf32>
    %543 = arith.addf %539, %542 : vector<8x128xf32>
    %c136 = arith.constant 136 : index
    %544 = memref.load %arg1[%c136] : memref<141xf32, #tpu.memory_space<smem>>
    %545 = vector.broadcast %544 : f32 to vector<8x128xf32>
    %546 = arith.mulf %388, %545 : vector<8x128xf32>
    %547 = arith.addf %543, %546 : vector<8x128xf32>
    %c137 = arith.constant 137 : index
    %548 = memref.load %arg1[%c137] : memref<141xf32, #tpu.memory_space<smem>>
    %549 = vector.broadcast %548 : f32 to vector<8x128xf32>
    %550 = arith.mulf %432, %549 : vector<8x128xf32>
    %551 = arith.addf %547, %550 : vector<8x128xf32>
    %c138 = arith.constant 138 : index
    %552 = memref.load %arg1[%c138] : memref<141xf32, #tpu.memory_space<smem>>
    %553 = vector.broadcast %552 : f32 to vector<8x128xf32>
    %554 = arith.mulf %476, %553 : vector<8x128xf32>
    %555 = arith.addf %551, %554 : vector<8x128xf32>
    %c139 = arith.constant 139 : index
    %556 = memref.load %arg1[%c139] : memref<141xf32, #tpu.memory_space<smem>>
    %557 = vector.broadcast %556 : f32 to vector<8x128xf32>
    %558 = arith.mulf %520, %557 : vector<8x128xf32>
    %559 = arith.addf %555, %558 : vector<8x128xf32>
    %c140 = arith.constant 140 : index
    %560 = memref.load %arg1[%c140] : memref<141xf32, #tpu.memory_space<smem>>
    %561 = vector.broadcast %560 : f32 to vector<8x128xf32>
    %562 = arith.addf %559, %561 : vector<8x128xf32>
    %c0_21 = arith.constant 0 : index
    %c0_22 = arith.constant 0 : index
    %563 = vector.load %arg3[%c0_21, %c0_22] : memref<8x128xf32, #tpu.memory_space<vmem>>, vector<8x128xf32>
    tpu.vector_store %arg3[%c0_21, %c0_22], %562 {strides = array<i32>} : memref<8x128xf32, #tpu.memory_space<vmem>>, vector<8x128xf32>,
    return
  }
  func.func @transform_0(%arg0: i32) -> i32 {
    %c0_i32 = arith.constant 0 : i32
    %c0_i32_0 = arith.constant 0 : i32
    return %c0_i32 : i32
  }
  func.func @transform_1(%arg0: i32) -> (i32, i32) {
    %c0_i32 = arith.constant 0 : i32
    %c0_i32_0 = arith.constant 0 : i32
    return %arg0, %c0_i32 : i32, i32
  }
  func.func @transform_2(%arg0: i32) -> (i32, i32) {
    %c0_i32 = arith.constant 0 : i32
    %c0_i32_0 = arith.constant 0 : i32
    return %arg0, %c0_i32 : i32, i32
  }
}

</mosaic_0001>

<bundles_post_ra>
// kernel: intelligence_net_forward.1
= control target key start
LH: loop header
LB: loop body
LE: loop exit
PB: predicated region body
PF: predicated region fallthrough
CT: control target
= control target key end

     0   :  { %7 = vsyncpa [#allocation3], 0  ;;  %s1319_s0 = inlined_call_operand.vmem [shape: f32[141], index: 0, kind: input, shape index: {}]   ;;  %s1320_s1 = inlined_call_operand.vmem [shape: f32[8,128], index: 1, kind: input, shape index: {}]   ;;  %s1321_s2 = inlined_call_operand.vmem [shape: f32[8,128], index: 2, kind: output, shape index: {}]  }
   0x1   :  { %s14_s11 = sshll.u32 %s1319_s0, 4  ;;  %s15_s11 = int_to_ptr.vmem [resolvable:$true] %s14_s11 }
   0x2   :  { %s714_s12 = scalar_lea.vmem %s15_s11, 32  ;;  %p719_p1 = scmp.lt.s32.totalorder %s15_s11, %s15_s11 }
   0x3   :  { %p715_p0 = scmp.ne.s32.totalorder %s15_s11, %s714_s12  ;;  %p720_p2 = scmp.lt.s32.totalorder %s714_s12, %s714_s12 }
   0x5   :  { %p721_p3 = por %p720_p2, %p719_p1 }
   0x7   :  { %p722_p4 = pnand %p721_p3, %p715_p0 }
   0x9   :  { %725 = shalt.err (!%p722_p4)
}
   0xa   :  { %s728_s13 = smov [#allocation2]  }
   0xb   :  { %17 = dma.vmem_to_smem %s15_s11, 32, %s728_s13, [#allocation3]  }
   0xc   :  { %726 = dma.done.wait [#allocation3], 32  }
   0xd   :  { %727 = vsyncadd [#allocation3], 4294967264 }
   0xe   :  { %23 = sfence }
   0xf   :  { %s25_s14 = sld [smem:[#allocation2]]  ;;  %s573_s15 = sld [smem:[#allocation2 + $0xa]]  ;;  %v754_v0 = vld [vmem:[%s1320_s1] sm:$0xff] }
  0x10   :  { %s574_s16 = sld [smem:[#allocation2 + $0x1]]  ;;  %s575_s17 = sld [smem:[#allocation2 + $0xb]] }
  0x11   :  { %s576_s18 = sld [smem:[#allocation2 + $0x2]]  ;;  %s747_s19 = sld [smem:[#allocation2 + $0xc]] }
  0x12   :  { %s578_s0 = sld [smem:[#allocation2 + $0x3]]  ;;  %s749_s20 = sld [smem:[#allocation2 + $0xd]] }
  0x13   :  { %s756_s23 = sld [smem:[#allocation2 + $0x4]]  ;;  %s758_s24 = sld [smem:[#allocation2 + $0xe]] }
  0x14   :  { %s760_s25 = sld [smem:[#allocation2 + $0x5]]  ;;  %s762_s26 = sld [smem:[#allocation2 + $0xf]] }
  0x15   :  { %v26_v1 = vstv %s25_s14  ;;  %v29_v2 = vstv %s573_s15  ;;  %s764_s27 = sld [smem:[#allocation2 + $0x6]]  ;;  %s766_s28 = sld [smem:[#allocation2 + $0x10]] }
  0x16   :  { %v27_v3 = vmul.f32 %v26_v1, %v754_v0  ;;  %v33_v4 = vstv %s574_s16  ;;  %v36_v5 = vstv %s575_s17  ;;  %s769_s1 = sld [smem:[#allocation2 + $0x7]]  ;;  %s771_s29 = sld [smem:[#allocation2 + $0x11]] }
  0x17   :  { %v34_v6 = vmul.f32 %v33_v4, %v754_v0  ;;  %v40_v7 = vstv %s576_s18  ;;  %v43_v8 = vstv %s747_s19  ;;  %s775_s30 = sld [smem:[#allocation2 + $0x8]]  ;;  %s777_s3 = sld [smem:[#allocation2 + $0x12]] }
  0x18   :  { %v30_v9 = vadd.f32 %v29_v2, %v27_v3  ;;  %v41_v10 = vmul.f32 %v40_v7, %v754_v0  ;;  %v47_v11 = vstv %s578_s0  ;;  %v50_v12 = vstv %s749_s20  ;;  %s781_s4 = sld [smem:[#allocation2 + $0x9]]  ;;  %s783_s5 = sld [smem:[#allocation2 + $0x13]] }
  0x19   :  { %v37_v13 = vadd.f32 %v36_v5, %v34_v6  ;;  %v48_v14 = vmul.f32 %v47_v11, %v754_v0  ;;  %v54_v15 = vstv %s756_s23  ;;  %v57_v16 = vstv %s758_s24  ;;  %s788_s6 = sld [smem:[#allocation2 + $0x14]]  ;;  %s790_s7 = sld [smem:[#allocation2 + $0x15]] }
  0x1a   :  { %v44_v17 = vadd.f32 %v43_v8, %v41_v10  ;;  %v55_v18 = vmul.f32 %v54_v15, %v754_v0  ;;  %v61_v19 = vstv %s760_s25  ;;  %s794_s8 = sld [smem:[#allocation2 + $0x16]]  ;;  %s796_s9 = sld [smem:[#allocation2 + $0x17]]  ;;  %v799_v22 = vmax.f32 %v30_v9, 0.0 }
  0x1b   :  { %v51_v20 = vadd.f32 %v50_v12, %v48_v14  ;;  %v62_v21 = vmul.f32 %v61_v19, %v754_v0  ;;  %v64_v24 = vstv %s762_s26  ;;  %v68_v25 = vstv %s764_s27  ;;  %s803_s10 = sld [smem:[#allocation2 + $0x18]]  ;;  %s805_s11 = sld [smem:[#allocation2 + $0x19]] }
  0x1c   :  { %v58_v23 = vadd.f32 %v57_v16, %v55_v18  ;;  %v807_v26 = vmax.f32 %v37_v13, 0.0  ;;  %v809_v27 = vmax.f32 %v44_v17, 0.0  ;;  %v69_v28 = vmul.f32 %v68_v25, %v754_v0  ;;  %s813_s12 = sld [smem:[#allocation2 + $0x1a]]  ;;  %s819_s13 = sld [smem:[#allocation2 + $0x1b]] }
  0x1d   :  { %v75_v29 = vstv %s769_s1  ;;  %v71_v30 = vstv %s766_s28  ;;  %v78_v32 = vstv %s771_s29  ;;  %v82_v33 = vstv %s775_s30  ;;  %s821_s14 = sld [smem:[#allocation2 + $0x1c]]  ;;  %s827_s15 = sld [smem:[#allocation2 + $0x1d]] }
  0x1e   :  { %v76_v31 = vmul.f32 %v75_v29, %v754_v0  ;;  %v823_v34 = vmax.f32 %v51_v20, 0.0  ;;  %v65_v35 = vadd.f32 %v64_v24, %v62_v21  ;;  %v83_v36 = vmul.f32 %v82_v33, %v754_v0  ;;  %s829_s16 = sld [smem:[#allocation2 + $0x1e]]  ;;  %s836_s17 = sld [smem:[#allocation2 + $0x1f]] }
  0x1f   :  { %v85_v37 = vstv %s777_s3  ;;  %v831_v38 = vmax.f32 %v58_v23, 0.0  ;;  %v89_v39 = vstv %s781_s4  ;;  %v92_v40 = vstv %s783_s5  ;;  %s838_s18 = sld [smem:[#allocation2 + $0x20]]  ;;  %s842_s19 = sld [smem:[#allocation2 + $0x21]] }
  0x20   :  { %v96_v41 = vstv %s788_s6  ;;  %v72_v42 = vadd.f32 %v71_v30, %v69_v28  ;;  %v79_v43 = vadd.f32 %v78_v32, %v76_v31  ;;  %v90_v44 = vmul.f32 %v89_v39, %v754_v0  ;;  %s847_s0 = sld [smem:[#allocation2 + $0x22]]  ;;  %s849_s20 = sld [smem:[#allocation2 + $0x23]] }
  0x21   :  { %v97_v45 = vmul.f32 %v96_v41, %v799_v22  ;;  %v86_v46 = vadd.f32 %v85_v37, %v83_v36  ;;  %v99_v47 = vstv %s790_s7  ;;  %v103_v48 = vstv %s794_s8  ;;  %s855_s21 = sld [smem:[#allocation2 + $0x24]]  ;;  %s864_s22 = sld [smem:[#allocation2 + $0x25]] }
  0x22   :  { %v107_v49 = vstv %s796_s9  ;;  %v851_v50 = vmax.f32 %v65_v35, 0.0  ;;  %v93_v51 = vadd.f32 %v92_v40, %v90_v44  ;;  %v100_v52 = vmul.f32 %v99_v47, %v807_v26  ;;  %s872_s23 = sld [smem:[#allocation2 + $0x28]]  ;;  %s874_s24 = sld [smem:[#allocation2 + $0x29]] }
  0x23   :  { %v104_v53 = vmul.f32 %v103_v48, %v809_v27  ;;  %v111_v54 = vstv %s803_s10  ;;  %v115_v55 = vstv %s805_s11  ;;  %v859_v56 = vmax.f32 %v72_v42, 0.0  ;;  %s879_s25 = sld [smem:[#allocation2 + $0x26]]  ;;  %s881_s26 = sld [smem:[#allocation2 + $0x27]] }
  0x24   :  { %v861_v57 = vmax.f32 %v79_v43, 0.0  ;;  %v101_v58 = vadd.f32 %v100_v52, %v97_v45  ;;  %v108_v59 = vmul.f32 %v107_v49, %v823_v34  ;;  %v866_v60 = vmax.f32 %v86_v46, 0.0  ;;  %s887_s27 = sld [smem:[#allocation2 + $0x2a]]  ;;  %s889_s28 = sld [smem:[#allocation2 + $0x2b]] }
  0x25   :  { %v868_v61 = vmax.f32 %v93_v51, 0.0  ;;  %v112_v62 = vmul.f32 %v111_v54, %v831_v38  ;;  %v119_v63 = vstv %s813_s12  ;;  %v116_v1 = vmul.f32 %v115_v55, %v851_v50  ;;  %s894_s1 = sld [smem:[#allocation2 + $0x2c]]  ;;  %s900_s29 = sld [smem:[#allocation2 + $0x2d]] }
  0x26   :  { %v105_v0 = vadd.f32 %v104_v53, %v101_v58  ;;  %v123_v2 = vstv %s819_s13  ;;  %v127_v3 = vstv %s821_s14  ;;  %v131_v4 = vstv %s827_s15  ;;  %s902_s30 = sld [smem:[#allocation2 + $0x2e]]  ;;  %s904_s3 = sld [smem:[#allocation2 + $0x78]] }
  0x27   :  { %v139_v5 = vstv %s829_s16  ;;  %v142_v6 = vstv %s836_s17  ;;  %v146_v7 = vstv %s838_s18  ;;  %v120_v12 = vmul.f32 %v119_v63, %v859_v56  ;;  %s913_s4 = sld [smem:[#allocation2 + $0x2f]]  ;;  %s915_s5 = sld [smem:[#allocation2 + $0x30]] }
  0x28   :  { %v109_v8 = vadd.f32 %v108_v59, %v105_v0  ;;  %v140_v9 = vmul.f32 %v139_v5, %v799_v22  ;;  %v143_v10 = vmul.f32 %v142_v6, %v807_v26  ;;  %v147_v11 = vmul.f32 %v146_v7, %v809_v27  ;;  %s921_s6 = sld [smem:[#allocation2 + $0x31]]  ;;  %s923_s7 = sld [smem:[#allocation2 + $0x32]] }
  0x29   :  { %v150_v13 = vstv %s842_s19  ;;  %v154_v14 = vstv %s847_s0  ;;  %v158_v15 = vstv %s849_s20  ;;  %v162_v19 = vstv %s855_s21  ;;  %s927_s8 = sld [smem:[#allocation2 + $0x33]]  ;;  %s933_s9 = sld [smem:[#allocation2 + $0x34]] }
  0x2a   :  { %v113_v16 = vadd.f32 %v112_v62, %v109_v8  ;;  %v144_v17 = vadd.f32 %v143_v10, %v140_v9  ;;  %v151_v18 = vmul.f32 %v150_v13, %v823_v34  ;;  %v124_v20 = vmul.f32 %v123_v2, %v861_v57  ;;  %s935_s10 = sld [smem:[#allocation2 + $0x35]]  ;;  %s942_s11 = sld [smem:[#allocation2 + $0x36]] }
  0x2b   :  { %v128_v21 = vmul.f32 %v127_v3, %v866_v60  ;;  %v132_v23 = vmul.f32 %v131_v4, %v868_v61  ;;  %v155_v28 = vmul.f32 %v154_v14, %v831_v38  ;;  %v159_v29 = vmul.f32 %v158_v15, %v851_v50  ;;  %s944_s12 = sld [smem:[#allocation2 + $0x37]]  ;;  %s948_s13 = sld [smem:[#allocation2 + $0x79]] }
  0x2c   :  { %v117_v24 = vadd.f32 %v116_v1, %v113_v16  ;;  %v148_v25 = vadd.f32 %v147_v11, %v144_v17  ;;  %v163_v30 = vmul.f32 %v162_v19, %v859_v56  ;;  %v166_v31 = vstv %s864_s22  ;;  %s950_s14 = sld [smem:[#allocation2 + $0x38]]  ;;  %s955_s15 = sld [smem:[#allocation2 + $0x39]] }
  0x2d   :  { %v182_v32 = vstv %s872_s23  ;;  %v185_v33 = vstv %s874_s24  ;;  %v170_v37 = vstv %s879_s25  ;;  %v174_v40 = vstv %s881_s26  ;;  %s960_s16 = sld [smem:[#allocation2 + $0x7a]]  ;;  %s967_s18 = sld [smem:[#allocation2 + $0x3b]] }
  0x2e   :  { %v121_v35 = vadd.f32 %v120_v12, %v117_v24  ;;  %v152_v36 = vadd.f32 %v151_v18, %v148_v25  ;;  %v183_v39 = vmul.f32 %v182_v32, %v799_v22  ;;  %v186_v41 = vmul.f32 %v185_v33, %v807_v26  ;;  %s965_s17 = sld [smem:[#allocation2 + $0x3a]]  ;;  %s971_s19 = sld [smem:[#allocation2 + $0x3c]] }
  0x2f   :  { %v189_v42 = vstv %s887_s27  ;;  %v193_v43 = vstv %s889_s28  ;;  %v197_v47 = vstv %s894_s1  ;;  %v201_v51 = vstv %s900_s29  ;;  %s973_s0 = sld [smem:[#allocation2 + $0x3d]]  ;;  %s978_s20 = sld [smem:[#allocation2 + $0x3e]] }
  0x30   :  { %v125_v44 = vadd.f32 %v124_v20, %v121_v35  ;;  %v156_v45 = vadd.f32 %v155_v28, %v152_v36  ;;  %v190_v46 = vmul.f32 %v189_v42, %v809_v27  ;;  %v187_v48 = vadd.f32 %v186_v41, %v183_v39  ;;  %s980_s21 = sld [smem:[#allocation2 + $0x3f]]  ;;  %s985_s22 = sld [smem:[#allocation2 + $0x40]] }
  0x31   :  { %v194_v49 = vmul.f32 %v193_v43, %v823_v34  ;;  %v205_v52 = vstv %s902_s30  ;;  %v135_v54 = vstv %s904_s3  ;;  %v167_v58 = vmul.f32 %v166_v31, %v861_v57  ;;  %s987_s23 = sld [smem:[#allocation2 + $0x41]]  ;;  %s995_s24 = sld [smem:[#allocation2 + $0x42]] }
  0x32   :  { %v129_v53 = vadd.f32 %v128_v21, %v125_v44  ;;  %v160_v55 = vadd.f32 %v159_v29, %v156_v45  ;;  %v171_v59 = vmul.f32 %v170_v37, %v866_v60  ;;  %v175_v62 = vmul.f32 %v174_v40, %v868_v61  ;;  %s1003_s25 = sld [smem:[#allocation2 + $0x43]]  ;;  %s1007_s26 = sld [smem:[#allocation2 + $0x44]] }
  0x33   :  { %v191_v63 = vadd.f32 %v190_v46, %v187_v48  ;;  %v198_v0 = vmul.f32 %v197_v47, %v831_v38  ;;  %v202_v2 = vmul.f32 %v201_v51, %v851_v50  ;;  %v206_v3 = vmul.f32 %v205_v52, %v859_v56  ;;  %s1009_s27 = sld [smem:[#allocation2 + $0x45]]  ;;  %s1015_s28 = sld [smem:[#allocation2 + $0x46]] }
  0x34   :  { %v164_v1 = vadd.f32 %v163_v30, %v160_v55  ;;  %v209_v4 = vstv %s913_s4  ;;  %v213_v6 = vstv %s915_s5  ;;  %v217_v7 = vstv %s921_s6  ;;  %s1017_s1 = sld [smem:[#allocation2 + $0x47]]  ;;  %s1021_s29 = sld [smem:[#allocation2 + $0x48]] }
  0x35   :  { %v195_v5 = vadd.f32 %v194_v49, %v191_v63  ;;  %v225_v8 = vstv %s923_s7  ;;  %v133_v9 = vadd.f32 %v132_v23, %v129_v53  ;;  %v228_v12 = vstv %s927_s8  ;;  %s1023_s30 = sld [smem:[#allocation2 + $0x49]]  ;;  %s1029_s3 = sld [smem:[#allocation2 + $0x4a]] }
  0x36   :  { %v168_v10 = vadd.f32 %v167_v58, %v164_v1  ;;  %v226_v11 = vmul.f32 %v225_v8, %v799_v22  ;;  %v229_v14 = vmul.f32 %v228_v12, %v807_v26  ;;  %v232_v15 = vstv %s933_s9  ;;  %s1031_s4 = sld [smem:[#allocation2 + $0x4b]]  ;;  %s1041_s6 = sld [smem:[#allocation2 + $0x4c]] }
  0x37   :  { %v199_v13 = vadd.f32 %v198_v0, %v195_v5  ;;  %v236_v16 = vstv %s935_s10  ;;  %v210_v18 = vmul.f32 %v209_v4, %v861_v57  ;;  %v233_v19 = vmul.f32 %v232_v15, %v809_v27  ;;  %s1037_s5 = sld [smem:[#allocation2 + $0x7b]]  ;;  %s1045_s7 = sld [smem:[#allocation2 + $0x7c]] }
  0x38   :  { %v172_v17 = vadd.f32 %v171_v59, %v168_v10  ;;  %v237_v20 = vmul.f32 %v236_v16, %v823_v34  ;;  %v230_v23 = vadd.f32 %v229_v14, %v226_v11  ;;  %v240_v24 = vstv %s942_s11  ;;  %s1054_s8 = sld [smem:[#allocation2 + $0x4d]]  ;;  %s1056_s9 = sld [smem:[#allocation2 + $0x4e]] }
  0x39   :  { %v203_v21 = vadd.f32 %v202_v2, %v199_v13  ;;  %v244_v25 = vstv %s944_s12  ;;  %v178_v28 = vstv %s948_s13  ;;  %v214_v29 = vmul.f32 %v213_v6, %v866_v60  ;;  %s1062_s10 = sld [smem:[#allocation2 + $0x50]]  ;;  %s1064_s11 = sld [smem:[#allocation2 + $0x51]] }
  0x3a   :  { %v218_v30 = vmul.f32 %v217_v7, %v868_v61  ;;  %v248_v31 = vstv %s950_s14  ;;  %v234_v33 = vadd.f32 %v233_v19, %v230_v23  ;;  %v241_v35 = vmul.f32 %v240_v24, %v831_v38  ;;  %s1068_s12 = sld [smem:[#allocation2 + $0x4f]]  ;;  %s1070_s13 = sld [smem:[#allocation2 + $0x52]] }
  0x3b   :  { %v207_v32 = vadd.f32 %v206_v3, %v203_v21  ;;  %v252_v36 = vstv %s955_s15  ;;  %v999_v37 = vadd.f32 %v135_v54, %v133_v9  ;;  %v176_v39 = vadd.f32 %v175_v62, %v172_v17  ;;  %s1076_s14 = sld [smem:[#allocation2 + $0x53]]  ;;  %s1078_s15 = sld [smem:[#allocation2 + $0x54]] }
  0x3c   :  { %v221_v40 = vstv %s960_s16  ;;  %v245_v41 = vmul.f32 %v244_v25, %v851_v50  ;;  %v238_v43 = vadd.f32 %v237_v20, %v234_v33  ;;  %v249_v44 = vmul.f32 %v248_v31, %v859_v56  ;;  %s1081_s16 = sld [smem:[#allocation2 + $0x7d]] }
  0x3d   :  { %v211_v42 = vadd.f32 %v210_v18, %v207_v32  ;;  %v253_v45 = vmul.f32 %v252_v36, %v861_v57  ;;  %v256_v46 = vstv %s965_s17  ;;  %v260_v47 = vstv %s967_s18  ;;  %s1087_s17 = sld [smem:[#allocation2 + $0x55]]  ;;  %s1089_s18 = sld [smem:[#allocation2 + $0x56]] }
  0x3e   :  { %v268_v48 = vstv %s971_s19  ;;  %v271_v49 = vstv %s973_s0  ;;  %v242_v52 = vadd.f32 %v241_v35, %v238_v43  ;;  %v275_v55 = vstv %s978_s20  ;;  %s1097_s19 = sld [smem:[#allocation2 + $0x57]]  ;;  %s1102_s0 = sld [smem:[#allocation2 + $0x58]] }
  0x3f   :  { %v215_v51 = vadd.f32 %v214_v29, %v211_v42  ;;  %v269_v53 = vmul.f32 %v268_v48, %v799_v22  ;;  %v272_v54 = vmul.f32 %v271_v49, %v807_v26  ;;  %v279_v58 = vstv %s980_s21  ;;  %s1104_s20 = sld [smem:[#allocation2 + $0x59]]  ;;  %s1110_s21 = sld [smem:[#allocation2 + $0x5a]] }
  0x40   :  { %v283_v59 = vstv %s985_s22  ;;  %v287_v62 = vstv %s987_s23  ;;  %v246_v0 = vadd.f32 %v245_v41, %v242_v52  ;;  %v276_v2 = vmul.f32 %v275_v55, %v809_v27  ;;  %s1112_s22 = sld [smem:[#allocation2 + $0x5b]]  ;;  %s1117_s23 = sld [smem:[#allocation2 + $0x5c]] }
  0x41   :  { %v219_v63 = vadd.f32 %v218_v30, %v215_v51  ;;  %v273_v1 = vadd.f32 %v272_v54, %v269_v53  ;;  %v137_v3 = vmax.f32 %v999_v37, 0.0  ;;  %v1035_v4 = vadd.f32 %v178_v28, %v176_v39 }
  0x42   :  { %v280_v5 = vmul.f32 %v279_v58, %v823_v34  ;;  %v291_v6 = vstv %s995_s24  ;;  %v250_v7 = vadd.f32 %v249_v44, %v246_v0  ;;  %v257_v8 = vmul.f32 %v256_v46, %v866_v60  ;;  %s1122_s24 = sld [smem:[#allocation2 + $0x5d]] }
  0x43   :  { %v277_v9 = vadd.f32 %v276_v2, %v273_v1  ;;  %v284_v10 = vmul.f32 %v283_v59, %v831_v38  ;;  %v1047_v11 = vadd.f32 %v221_v40, %v219_v63  ;;  %v261_v12 = vmul.f32 %v260_v47, %v868_v61 }
  0x44   :  { %v288_v13 = vmul.f32 %v287_v62, %v851_v50  ;;  %v295_v14 = vstv %s1003_s25  ;;  %v254_v15 = vadd.f32 %v253_v45, %v250_v7  ;;  %v292_v17 = vmul.f32 %v291_v6, %v859_v56  ;;  %s1124_s25 = sld [smem:[#allocation2 + $0x5e]] }
  0x45   :  { %v281_v16 = vadd.f32 %v280_v5, %v277_v9  ;;  %v299_v18 = vstv %s1007_s26  ;;  %v296_v19 = vmul.f32 %v295_v14, %v861_v57  ;;  %v303_v20 = vstv %s1009_s27  ;;  %s1128_s26 = sld [smem:[#allocation2 + $0x5f]]  ;;  %s1134_s27 = sld [smem:[#allocation2 + $0x7e]] }
  0x46   :  { %v311_v21 = vstv %s1015_s28  ;;  %v314_v23 = vstv %s1017_s1  ;;  %v258_v24 = vadd.f32 %v257_v8, %v254_v15  ;;  %v318_v30 = vstv %s1021_s29  ;;  %s1136_s28 = sld [smem:[#allocation2 + $0x60]]  ;;  %s1143_s1 = sld [smem:[#allocation2 + $0x61]] }
  0x47   :  { %v285_v25 = vadd.f32 %v284_v10, %v281_v16  ;;  %v312_v28 = vmul.f32 %v311_v21, %v799_v22  ;;  %v315_v29 = vmul.f32 %v314_v23, %v807_v26  ;;  %v322_v31 = vstv %s1023_s30  ;;  %s1147_s29 = sld [smem:[#allocation2 + $0x62]]  ;;  %s1149_s30 = sld [smem:[#allocation2 + $0x63]] }
  0x48   :  { %v326_v32 = vstv %s1029_s3  ;;  %v330_v33 = vstv %s1031_s4  ;;  %v262_v35 = vadd.f32 %v261_v12, %v258_v24  ;;  %v319_v40 = vmul.f32 %v318_v30, %v809_v27  ;;  %s1155_s3 = sld [smem:[#allocation2 + $0x64]]  ;;  %s1157_s4 = sld [smem:[#allocation2 + $0x65]] }
  0x49   :  { %v289_v36 = vadd.f32 %v288_v13, %v285_v25  ;;  %v316_v39 = vadd.f32 %v315_v29, %v312_v28  ;;  %v180_v41 = vmax.f32 %v1035_v4, 0.0  ;;  %v264_v42 = vstv %s1037_s5  ;;  %s1162_s5 = sld [smem:[#allocation2 + $0x66]] }
  0x4a   :  { %v323_v43 = vmul.f32 %v322_v31, %v823_v34  ;;  %v334_v44 = vstv %s1041_s6  ;;  %v307_v46 = vstv %s1045_s7  ;;  %v327_v48 = vmul.f32 %v326_v32, %v831_v38  ;;  %s1164_s6 = sld [smem:[#allocation2 + $0x67]]  ;;  %s1189_s7 = sld [smem:[#allocation2 + $0x6b]] }
  0x4b   :  { %v293_v45 = vadd.f32 %v292_v17, %v289_v36  ;;  %v320_v47 = vadd.f32 %v319_v40, %v316_v39  ;;  %v223_v49 = vmax.f32 %v1047_v11, 0.0  ;;  %v300_v51 = vmul.f32 %v299_v18, %v866_v60 }
  0x4c   :  { %v304_v52 = vmul.f32 %v303_v20, %v868_v61  ;;  %v331_v53 = vmul.f32 %v330_v33, %v851_v50  ;;  %v1099_v54 = vadd.f32 %v264_v42, %v262_v35  ;;  %v335_v59 = vmul.f32 %v334_v44, %v859_v56 }
  0x4d   :  { %v297_v55 = vadd.f32 %v296_v19, %v293_v45  ;;  %v324_v58 = vadd.f32 %v323_v43, %v320_v47  ;;  %v338_v62 = vstv %s1054_s8  ;;  %v342_v63 = vstv %s1056_s9  ;;  %s1169_s8 = sld [smem:[#allocation2 + $0x68]]  ;;  %s1171_s9 = sld [smem:[#allocation2 + $0x69]] }
  0x4e   :  { %v354_v0 = vstv %s1062_s10  ;;  %v357_v1 = vstv %s1064_s11  ;;  %v346_v5 = vstv %s1068_s12  ;;  %v361_v9 = vstv %s1070_s13  ;;  %s1182_s10 = sld [smem:[#allocation2 + $0x6a]]  ;;  %s1193_s11 = sld [smem:[#allocation2 + $0x6c]] }
  0x4f   :  { %v328_v2 = vadd.f32 %v327_v48, %v324_v58  ;;  %v355_v6 = vmul.f32 %v354_v0, %v799_v22  ;;  %v358_v7 = vmul.f32 %v357_v1, %v807_v26  ;;  %v301_v8 = vadd.f32 %v300_v51, %v297_v55  ;;  %s1195_s12 = sld [smem:[#allocation2 + $0x6d]]  ;;  %s1201_s13 = sld [smem:[#allocation2 + $0x6e]] }
  0x50   :  { %v365_v10 = vstv %s1076_s14  ;;  %v369_v12 = vstv %s1078_s15  ;;  %v339_v14 = vmul.f32 %v338_v62, %v861_v57  ;;  %v362_v16 = vmul.f32 %v361_v9, %v809_v27  ;;  %s1203_s14 = sld [smem:[#allocation2 + $0x6f]]  ;;  %s1207_s15 = sld [smem:[#allocation2 + $0x70]] }
  0x51   :  { %v332_v13 = vadd.f32 %v331_v53, %v328_v2  ;;  %v359_v15 = vadd.f32 %v358_v7, %v355_v6  ;;  %v350_v17 = vstv %s1081_s16  ;;  %v366_v18 = vmul.f32 %v365_v10, %v823_v34  ;;  %s1238_s16 = sld [smem:[#allocation2 + $0x80]] }
  0x52   :  { %v373_v19 = vstv %s1087_s17  ;;  %v377_v20 = vstv %s1089_s18  ;;  %v266_v21 = vmax.f32 %v1099_v54, 0.0  ;;  %v370_v25 = vmul.f32 %v369_v12, %v831_v38  ;;  %s1209_s17 = sld [smem:[#allocation2 + $0x71]]  ;;  %s1215_s18 = sld [smem:[#allocation2 + $0x72]] }
  0x53   :  { %v336_v23 = vadd.f32 %v335_v59, %v332_v13  ;;  %v363_v24 = vadd.f32 %v362_v16, %v359_v15  ;;  %v305_v28 = vadd.f32 %v304_v52, %v301_v8  ;;  %v343_v29 = vmul.f32 %v342_v63, %v866_v60 }
  0x54   :  { %v347_v30 = vmul.f32 %v346_v5, %v868_v61  ;;  %v381_v31 = vstv %s1097_s19  ;;  %v374_v35 = vmul.f32 %v373_v19, %v851_v50  ;;  %v378_v36 = vmul.f32 %v377_v20, %v859_v56  ;;  %s1217_s19 = sld [smem:[#allocation2 + $0x73]] }
  0x55   :  { %v340_v32 = vadd.f32 %v339_v14, %v336_v23  ;;  %v367_v33 = vadd.f32 %v366_v18, %v363_v24  ;;  %v385_v39 = vstv %s1102_s0  ;;  %v389_v40 = vstv %s1104_s20  ;;  %s1225_s0 = sld [smem:[#allocation2 + $0x7f]]  ;;  %s1231_s20 = sld [smem:[#allocation2 + $0x74]] }
  0x56   :  { %v397_v42 = vstv %s1110_s21  ;;  %v400_v43 = vstv %s1112_s22  ;;  %v382_v45 = vmul.f32 %v381_v31, %v861_v57  ;;  %v404_v52 = vstv %s1117_s23  ;;  %s1242_s21 = sld [smem:[#allocation2 + $0x75]]  ;;  %s1244_s22 = sld [smem:[#allocation2 + $0x76]] }
  0x57   :  { %v371_v44 = vadd.f32 %v370_v25, %v367_v33  ;;  %v398_v47 = vmul.f32 %v397_v42, %v799_v22  ;;  %v401_v48 = vmul.f32 %v400_v43, %v807_v26  ;;  %v344_v51 = vadd.f32 %v343_v29, %v340_v32  ;;  %s1250_s23 = sld [smem:[#allocation2 + $0x82]] }
  0x58   :  { %v408_v53 = vstv %s1122_s24  ;;  %v412_v55 = vstv %s1124_s25  ;;  %v405_v62 = vmul.f32 %v404_v52, %v809_v27  ;;  %v416_v63 = vstv %s1128_s26  ;;  %s1252_s24 = sld [smem:[#allocation2 + $0x83]]  ;;  %s1256_s25 = sld [smem:[#allocation2 + $0x84]] }
  0x59   :  { %v375_v58 = vadd.f32 %v374_v35, %v371_v44  ;;  %v402_v59 = vadd.f32 %v401_v48, %v398_v47  ;;  %v1177_v0 = vadd.f32 %v307_v46, %v305_v28  ;;  %v393_v1 = vstv %s1134_s27  ;;  %s1262_s26 = sld [smem:[#allocation2 + $0x85]]  ;;  %s1264_s27 = sld [smem:[#allocation2 + $0x86]] }
  0x5a   :  { %v409_v2 = vmul.f32 %v408_v53, %v823_v34  ;;  %v420_v5 = vstv %s1136_s28  ;;  %v386_v7 = vmul.f32 %v385_v39, %v866_v60  ;;  %v413_v9 = vmul.f32 %v412_v55, %v831_v38  ;;  %s1271_s28 = sld [smem:[#allocation2 + $0x77]] }
  0x5b   :  { %v379_v6 = vadd.f32 %v378_v36, %v375_v58  ;;  %v406_v8 = vadd.f32 %v405_v62, %v402_v59  ;;  %v348_v10 = vadd.f32 %v347_v30, %v344_v51  ;;  %v390_v46 = vmul.f32 %v389_v40, %v868_v61 }
  0x5c   :  { %v417_v12 = vmul.f32 %v416_v63, %v851_v50  ;;  %v424_v13 = vstv %s1143_s1  ;;  %v421_v16 = vmul.f32 %v420_v5, %v859_v56  ;;  %v428_v18 = vstv %s1147_s29  ;;  %s1273_s1 = sld [smem:[#allocation2 + $0x87]]  ;;  %s1281_s29 = sld [smem:[#allocation2 + $0x88]] }
  0x5d   :  { %v383_v14 = vadd.f32 %v382_v45, %v379_v6  ;;  %v410_v15 = vadd.f32 %v409_v2, %v406_v8  ;;  %v425_v19 = vmul.f32 %v424_v13, %v861_v57  ;;  %v432_v20 = vstv %s1149_s30  ;;  %s1288_s30 = sld [smem:[#allocation2 + $0x89]] }
  0x5e   :  { %v440_v23 = vstv %s1155_s3  ;;  %v443_v24 = vstv %s1157_s4  ;;  %v447_v31 = vstv %s1162_s5  ;;  %v451_v32 = vstv %s1164_s6  ;;  %s1295_s3 = sld [smem:[#allocation2 + $0x81]]  ;;  %s1300_s4 = sld [smem:[#allocation2 + $0x8a]] }
  0x5f   :  { %v387_v25 = vadd.f32 %v386_v7, %v383_v14  ;;  %v414_v28 = vadd.f32 %v413_v9, %v410_v15  ;;  %v441_v29 = vmul.f32 %v440_v23, %v799_v22  ;;  %v444_v30 = vmul.f32 %v443_v24, %v807_v26  ;;  %s711_s5 = sld [smem:[#allocation2 + $0x8b]]  ;;  %s712_s6 = sld [smem:[#allocation2 + $0x8c]] }
  0x60   :  { %v455_v33 = vstv %s1169_s8  ;;  %v459_v35 = vstv %s1171_s9  ;;  %v448_v42 = vmul.f32 %v447_v31, %v809_v27  ;;  %v309_v43 = vmax.f32 %v1177_v0, 0.0 }
  0x61   :  { %v391_v36 = vadd.f32 %v390_v46, %v387_v25  ;;  %v418_v39 = vadd.f32 %v417_v12, %v414_v28  ;;  %v445_v40 = vadd.f32 %v444_v30, %v441_v29  ;;  %v1223_v44 = vadd.f32 %v350_v17, %v348_v10 }
  0x62   :  { %v452_v45 = vmul.f32 %v451_v32, %v823_v34  ;;  %v463_v47 = vstv %s1182_s10  ;;  %v429_v51 = vmul.f32 %v428_v18, %v866_v60  ;;  %v456_v53 = vmul.f32 %v455_v33, %v831_v38 }
  0x63   :  { %v422_v48 = vadd.f32 %v421_v16, %v418_v39  ;;  %v449_v52 = vadd.f32 %v448_v42, %v445_v40  ;;  %v1233_v55 = vadd.f32 %v393_v1, %v391_v36  ;;  %v433_v17 = vmul.f32 %v432_v20, %v868_v61 }
  0x64   :  { %v460_v58 = vmul.f32 %v459_v35, %v851_v50  ;;  %v467_v59 = vstv %s1189_s7  ;;  %v464_v2 = vmul.f32 %v463_v47, %v859_v56  ;;  %v471_v5 = vstv %s1193_s11 }
  0x65   :  { %v426_v62 = vadd.f32 %v425_v19, %v422_v48  ;;  %v453_v63 = vadd.f32 %v452_v45, %v449_v52  ;;  %v468_v1 = vmul.f32 %v467_v59, %v861_v57  ;;  %v475_v6 = vstv %s1195_s12 }
  0x66   :  { %v483_v7 = vstv %s1201_s13  ;;  %v486_v8 = vstv %s1203_s14  ;;  %v490_v13 = vstv %s1207_s15  ;;  %v494_v14 = vstv %s1209_s17 }
  0x67   :  { %v430_v9 = vadd.f32 %v429_v51, %v426_v62  ;;  %v457_v10 = vadd.f32 %v456_v53, %v453_v63  ;;  %v484_v46 = vmul.f32 %v483_v7, %v799_v22  ;;  %v487_v12 = vmul.f32 %v486_v8, %v807_v26 }
  0x68   :  { %v498_v15 = vstv %s1215_s18  ;;  %v502_v16 = vstv %s1217_s19  ;;  %v491_v23 = vmul.f32 %v490_v13, %v809_v27  ;;  %v352_v22 = vmax.f32 %v1223_v44, 0.0 }
  0x69   :  { %v434_v18 = vadd.f32 %v433_v17, %v430_v9  ;;  %v461_v19 = vadd.f32 %v460_v58, %v457_v10  ;;  %v488_v20 = vadd.f32 %v487_v12, %v484_v46  ;;  %v436_v26 = vstv %s1225_s0 }
  0x6a   :  { %v472_v24 = vmul.f32 %v471_v5, %v866_v60  ;;  %v495_v25 = vmul.f32 %v494_v14, %v823_v34  ;;  %v499_v30 = vmul.f32 %v498_v15, %v831_v38  ;;  %v506_v27 = vstv %s1231_s20 }
  0x6b   :  { %v465_v28 = vadd.f32 %v464_v2, %v461_v19  ;;  %v492_v29 = vadd.f32 %v491_v23, %v488_v20  ;;  %v395_v31 = vmax.f32 %v1233_v55, 0.0  ;;  %v476_v32 = vmul.f32 %v475_v6, %v868_v61 }
  0x6c   :  { %v479_v33 = vstv %s1238_s16  ;;  %v503_v35 = vmul.f32 %v502_v16, %v851_v50  ;;  %v437_v34 = vadd.f32 %v436_v26, %v434_v18  ;;  %v510_v40 = vstv %s1242_s21 }
  0x6d   :  { %v469_v36 = vadd.f32 %v468_v1, %v465_v28  ;;  %v496_v39 = vadd.f32 %v495_v25, %v492_v29  ;;  %v507_v42 = vmul.f32 %v506_v27, %v859_v56  ;;  %v514_v38 = vstv %s1244_s22 }
  0x6e   :  { %v526_v44 = vstv %s1250_s23  ;;  %v529_v45 = vstv %s1252_s24  ;;  %v511_v52 = vmul.f32 %v510_v40, %v861_v57  ;;  %v533_v56 = vstv %s1256_s25 }
  0x6f   :  { %v473_v47 = vadd.f32 %v472_v24, %v469_v36  ;;  %v500_v48 = vadd.f32 %v499_v30, %v496_v39  ;;  %v527_v50 = vmul.f32 %v526_v44, %v137_v3  ;;  %v530_v51 = vmul.f32 %v529_v45, %v180_v41 }
  0x70   :  { %v537_v53 = vstv %s1262_s26  ;;  %v541_v55 = vstv %s1264_s27  ;;  %v534_v37 = vmul.f32 %v533_v56, %v223_v49  ;;  %v515_v3 = vmul.f32 %v514_v38, %v866_v60 }
  0x71   :  { %v477_v17 = vadd.f32 %v476_v32, %v473_v47  ;;  %v504_v58 = vadd.f32 %v503_v35, %v500_v48  ;;  %v531_v59 = vadd.f32 %v530_v51, %v527_v50  ;;  %v518_v4 = vstv %s1271_s28 }
  0x72   :  { %v538_v57 = vmul.f32 %v537_v53, %v266_v21  ;;  %v545_v41 = vstv %s1273_s1  ;;  %v542_v5 = vmul.f32 %v541_v55, %v309_v43  ;;  %v438_v1 = vmax.f32 %v437_v34, 0.0 }
  0x73   :  { %v480_v62 = vadd.f32 %v479_v33, %v477_v17  ;;  %v508_v63 = vadd.f32 %v507_v42, %v504_v58  ;;  %v535_v2 = vadd.f32 %v534_v37, %v531_v59  ;;  %v549_v6 = vstv %s1281_s29 }
  0x74   :  { %v519_v49 = vmul.f32 %v518_v4, %v868_v61  ;;  %v546_v7 = vmul.f32 %v545_v41, %v352_v22  ;;  %v553_v8 = vstv %s1288_s30  ;;  %v550_v10 = vmul.f32 %v549_v6, %v395_v31 }
  0x75   :  { %v512_v11 = vadd.f32 %v511_v52, %v508_v63  ;;  %v539_v60 = vadd.f32 %v538_v57, %v535_v2  ;;  %v481_v54 = vmax.f32 %v480_v62, 0.0  ;;  %v522_v46 = vstv %s1295_s3 }
  0x76   :  { %v557_v12 = vstv %s1300_s4  ;;  %v554_v0 = vmul.f32 %v553_v8, %v438_v1  ;;  %v561_v18 = vstv %s711_s5  ;;  %v565_v22 = vstv %s712_s6 }
  0x77   :  { %v516_v21 = vadd.f32 %v515_v3, %v512_v11  ;;  %v543_v9 = vadd.f32 %v542_v5, %v539_v60  ;;  %v558_v16 = vmul.f32 %v557_v12, %v481_v54 }
  0x79   :  { %v520_v13 = vadd.f32 %v519_v49, %v516_v21  ;;  %v547_v14 = vadd.f32 %v546_v7, %v543_v9 }
  0x7b   :  { %v523_v43 = vadd.f32 %v522_v46, %v520_v13  ;;  %v551_v15 = vadd.f32 %v550_v10, %v547_v14 }
  0x7d   :  { %v524_v19 = vmax.f32 %v523_v43, 0.0  ;;  %v555_v20 = vadd.f32 %v554_v0, %v551_v15 }
  0x7f   :  { %v559_v61 = vadd.f32 %v558_v16, %v555_v20  ;;  %v562_v23 = vmul.f32 %v561_v18, %v524_v19 }
  0x81   :  { %v563_v26 = vadd.f32 %v562_v23, %v559_v61 }
  0x83   :  { %v566_v24 = vadd.f32 %v565_v22, %v563_v26 }
  0x85   :  { %567 = vst [vmem:[%s1321_s2] sm:$0xff] %v566_v24 }
  0x86   :  { %572 = vsyncpa [#allocation3], 1 }

</bundles_post_ra>
